<compile_context>
chip_gen: v5e
topology: v5e:2x2
jax: 0.10.0
libtpu: 0.0.40
codegen_flags: <defaults>
</compile_context>

<pallas_src>
import math
import functools

import numpy as np
import jax
import jax.numpy as jnp
from jax import lax
from jax.experimental import pallas as pl
from jax.experimental.pallas import tpu as pltpu

# MXU inputs are bf16 (full MXU throughput on v5e/v6e/v7x); accumulation / LN / softmax f32.
MATMUL_COMPUTE_DTYPE = jnp.bfloat16
# Inter-kernel activation storage dtype (q/k/v, attention output). Residual stream stays f32.
ACT_DTYPE = jnp.bfloat16
# TODO(synk): bert-pytorch-style LayerNorm uses eps=1e-6; torch.nn.LayerNorm default is 1e-5.
LN_EPS = 1e-6

_SQRT_2_OVER_PI = 0.7978845608028654

# Tile targets (bf16 compute keeps the double-buffered working set small enough for v7x).
TM_TARGET = 512
TN_TARGET = 512
TK_TARGET = 1024


def _default_vmem_limit():
    cap = 128 * 1024 * 1024
    try:
        info = pltpu.get_tpu_info()
        cap = int(getattr(info, "vmem_capacity_bytes", cap))
    except Exception:
        pass
    # 96 MiB on 128-MiB parts (v5e/v6e); 48 MiB on v7x's 64-MiB VMEM.
    return int(min(96 * 1024 * 1024, (cap * 3) // 4))


_VMEM_LIMIT = _default_vmem_limit()


def _tile(dim, target, align):
    """Largest `align`-multiple <= target that divides dim; full dim if it already fits."""
    if dim <= target:
        return dim
    t = (target // align) * align
    while t >= align:
        if dim % t == 0:
            return t
        t -= align
    # TODO(synk): awkward dims fall back to a single full block; pad M/N in the wrapper
    # instead if this ever exceeds the VMEM budget.
    return dim


def _gelu(y):
    # BERT tanh-approximation GELU (f32).
    return 0.5 * y * (1.0 + jnp.tanh(_SQRT_2_OVER_PI * (y + 0.044715 * y * y * y)))


# --------------------------------------------------------------------------
# Generic fused linear:  out = [ +residual ] [ +pos_enc ] act( x @ w + b )
# Single-K fast path (no accumulator scratch) when the whole K dim fits one block.
# --------------------------------------------------------------------------

def _linear_kernel(*refs, activation, residual, pos, single_k, compute_dtype):
    it = iter(refs)
    x_ref = next(it)
    w_ref = next(it)
    b_ref = next(it)
    p_ref = next(it) if pos else None
    r_ref = next(it) if residual else None
    o_ref = next(it)
    acc_ref = None if single_k else next(it)

    def epilogue(acc):
        y = acc + b_ref[...].astype(jnp.float32)
        if activation == "gelu":
            y = _gelu(y)
        if pos:
            y = y + p_ref[...].astype(jnp.float32)
        if residual:
            y = y + r_ref[...].astype(jnp.float32)
        o_ref[...] = y.astype(o_ref.dtype)

    part = jnp.dot(x_ref[...].astype(compute_dtype),
                   w_ref[...].astype(compute_dtype),
                   preferred_element_type=jnp.float32)

    if single_k:
        epilogue(part)
    else:
        kk = pl.program_id(2)

        @pl.when(kk == 0)
        def _init():
            acc_ref[...] = jnp.zeros_like(acc_ref)

        acc_ref[...] += part

        @pl.when(kk == pl.num_programs(2) - 1)
        def _fin():
            epilogue(acc_ref[...])


def linear(x, w, b, *, activation=None, residual=None, pos_enc=None,
           out_dtype=jnp.float32, compute_dtype=MATMUL_COMPUTE_DTYPE):
    """nn.Linear semantics: x:(..., K) -> (..., N); w stored (K, N).
    residual fuses `out += residual`; pos_enc=(pe[T,N], T) fuses a T-periodic row add."""
    orig = x.shape
    K = orig[-1]
    M = int(np.prod(orig[:-1]))
    N = w.shape[1]
    x2 = x.reshape(M, K)

    if pos_enc is not None:
        pe, T = pos_enc
        tm = _tile(T, TM_TARGET, 8)     # tm | T so PE rows line up with each M block
        ntb = T // tm
    else:
        ntb = None
        tm = _tile(M, TM_TARGET, 8)
    tn = _tile(N, TN_TARGET, 128)
    tk = _tile(K, TK_TARGET, 128)
    nk = K // tk
    single_k = (nk == 1)
    grid = (M // tm, N // tn, nk)

    in_specs = [
        pl.BlockSpec((tm, tk), lambda i, j, k: (i, k)),
        pl.BlockSpec((tk, tn), lambda i, j, k: (k, j)),
        pl.BlockSpec((1, tn), lambda i, j, k: (0, j)),
    ]
    args = [x2, w, b.reshape(1, N)]
    if pos_enc is not None:
        in_specs.append(pl.BlockSpec((tm, tn), lambda i, j, k, ntb=ntb: (i % ntb, j)))
        args.append(pe)
    if residual is not None:
        in_specs.append(pl.BlockSpec((tm, tn), lambda i, j, k: (i, j)))
        args.append(residual.reshape(M, N))

    scratch = [] if single_k else [pltpu.VMEM((tm, tn), jnp.float32)]

    out = pl.pallas_call(
        functools.partial(_linear_kernel, activation=activation,
                          residual=residual is not None, pos=pos_enc is not None,
                          single_k=single_k, compute_dtype=compute_dtype),
        out_shape=jax.ShapeDtypeStruct((M, N), out_dtype),
        grid=grid,
        in_specs=in_specs,
        out_specs=pl.BlockSpec((tm, tn), lambda i, j, k: (i, j)),
        scratch_shapes=scratch,
        compiler_params=pltpu.CompilerParams(
            dimension_semantics=("parallel", "parallel", "arbitrary"),
            vmem_limit_bytes=_VMEM_LIMIT),
    )(*args)
    return out.reshape(orig[:-1] + (N,))


# --------------------------------------------------------------------------
# Fused LayerNorm + Q/K/V projection: LN computed once per row block, one activation
# read feeds three bf16 MXU passes. Outputs stored bf16.
# --------------------------------------------------------------------------

def _ln_qkv_kernel(x_ref, g_ref, be_ref, wq_ref, wk_ref, wv_ref,
                   bq_ref, bk_ref, bv_ref, q_ref, k_ref, v_ref,
                   *, eps, compute_dtype):
    x = x_ref[...].astype(jnp.float32)
    mu = jnp.mean(x, axis=-1, keepdims=True)
    var = jnp.mean(jnp.square(x - mu), axis=-1, keepdims=True)
    xn = (x - mu) * lax.rsqrt(var + eps)
    xn = (xn * g_ref[...] + be_ref[...]).astype(compute_dtype)
    for w_ref, b_ref, o_ref in ((wq_ref, bq_ref, q_ref),
                                (wk_ref, bk_ref, k_ref),
                                (wv_ref, bv_ref, v_ref)):
        o_ref[...] = (jnp.dot(xn, w_ref[...].astype(compute_dtype),
                              preferred_element_type=jnp.float32)
                      + b_ref[...].astype(jnp.float32)).astype(o_ref.dtype)


def ln_qkv(x, gamma, beta, wq, bq, wk, bk, wv, bv, *, eps=LN_EPS,
           compute_dtype=MATMUL_COMPUTE_DTYPE, out_dtype=ACT_DTYPE):
    B, T, H = x.shape
    M = B * T
    N = wq.shape[1]
    tm = _tile(M, TM_TARGET, 8)
    grid = (M // tm,)

    x_spec = pl.BlockSpec((tm, H), lambda i: (i, 0))
    vec_spec = pl.BlockSpec((1, H), lambda i: (0, 0))
    w_spec = pl.BlockSpec((H, N), lambda i: (0, 0))
    b_spec = pl.BlockSpec((1, N), lambda i: (0, 0))
    o_spec = pl.BlockSpec((tm, N), lambda i: (i, 0))

    q, k, v = pl.pallas_call(
        functools.partial(_ln_qkv_kernel, eps=eps, compute_dtype=compute_dtype),
        out_shape=(jax.ShapeDtypeStruct((M, N), out_dtype),) * 3,
        grid=grid,
        in_specs=[x_spec, vec_spec, vec_spec, w_spec, w_spec, w_spec,
                  b_spec, b_spec, b_spec],
        out_specs=(o_spec, o_spec, o_spec),
        compiler_params=pltpu.CompilerParams(
            dimension_semantics=("parallel",),
            vmem_limit_bytes=_VMEM_LIMIT),
    )(x.reshape(M, H), gamma.reshape(1, H), beta.reshape(1, H),
      wq, wk, wv, bq.reshape(1, N), bk.reshape(1, N), bv.reshape(1, N))
    return q.reshape(B, T, N), k.reshape(B, T, N), v.reshape(B, T, N)


# --------------------------------------------------------------------------
# Flash-style multi-head attention over (B*heads, T, dh): heads live on the batch grid
# axis, so there is no per-head lane slicing and no finalize concatenate.
# --------------------------------------------------------------------------

def _flash_attn_kernel(q_ref, k_ref, v_ref, bias_ref, o_ref,
                       m_sc, l_sc, acc_sc, *, scale):
    ki = pl.program_id(2)

    @pl.when(ki == 0)
    def _init():
        m_sc[...] = jnp.full_like(m_sc, -1e30)
        l_sc[...] = jnp.zeros_like(l_sc)
        acc_sc[...] = jnp.zeros_like(acc_sc)

    qh = q_ref[0]                                     # (tq, dh) bf16
    kh = k_ref[0]                                     # (tk, dh) bf16
    s = lax.dot_general(qh, kh, (((1,), (1,)), ((), ())),
                        preferred_element_type=jnp.float32)      # f32 (tq, tk)
    s = s * scale + bias_ref[0]                       # key mask: 0 valid, -1e9 masked

    m_prev = m_sc[...]
    m_new = jnp.maximum(m_prev, jnp.max(s, axis=-1, keepdims=True))
    alpha = jnp.exp(m_prev - m_new)
    p = jnp.exp(s - m_new)
    l_sc[...] = alpha * l_sc[...] + jnp.sum(p, axis=-1, keepdims=True)
    acc_sc[...] = alpha * acc_sc[...] + jnp.dot(
        p.astype(v_ref.dtype), v_ref[0], preferred_element_type=jnp.float32)
    m_sc[...] = m_new

    @pl.when(ki == pl.num_programs(2) - 1)
    def _fin():
        o_ref[0] = (acc_sc[...] * pl.reciprocal(l_sc[...], approx=True)).astype(o_ref.dtype)


def flash_attention(q, k, v, bias, *, heads, out_dtype=ACT_DTYPE):
    """q,k,v: (B, T, H) with heads packed along H; bias: (B, 1, T) additive key-mask bias."""
    B, T, H = q.shape
    dh = H // heads
    scale = 1.0 / math.sqrt(dh)

    def split(t):   # (B, T, H) -> (B*heads, T, dh)
        return t.reshape(B, T, heads, dh).transpose(0, 2, 1, 3).reshape(B * heads, T, dh)

    qh, kh, vh = split(q), split(k), split(v)
    bias_h = jnp.repeat(bias, heads, axis=0)          # (B*heads, 1, T)

    tq = _tile(T, TM_TARGET, 8)
    tk = _tile(T, TN_TARGET, 128)
    grid = (B * heads, T // tq, T // tk)

    o = pl.pallas_call(
        functools.partial(_flash_attn_kernel, scale=scale),
        out_shape=jax.ShapeDtypeStruct((B * heads, T, dh), out_dtype),
        grid=grid,
        in_specs=[
            pl.BlockSpec((1, tq, dh), lambda b, qi, ki: (b, qi, 0)),
            pl.BlockSpec((1, tk, dh), lambda b, qi, ki: (b, ki, 0)),
            pl.BlockSpec((1, tk, dh), lambda b, qi, ki: (b, ki, 0)),
            pl.BlockSpec((1, 1, tk), lambda b, qi, ki: (b, 0, ki)),
        ],
        out_specs=pl.BlockSpec((1, tq, dh), lambda b, qi, ki: (b, qi, 0)),
        scratch_shapes=[
            pltpu.VMEM((tq, 1), jnp.float32),    # running max
            pltpu.VMEM((tq, 1), jnp.float32),    # running denom
            pltpu.VMEM((tq, dh), jnp.float32),   # running numerator
        ],
        compiler_params=pltpu.CompilerParams(
            dimension_semantics=("parallel", "parallel", "arbitrary"),
            vmem_limit_bytes=_VMEM_LIMIT),
    )(qh, kh, vh, bias_h)

    return o.reshape(B, heads, T, dh).transpose(0, 2, 1, 3).reshape(B, T, H)


# --------------------------------------------------------------------------
# Fused feed-forward sublayer:  x + FF2( GELU( FF1( LayerNorm(x) ) ) )
# Grids over the 4H intermediate so it never touches HBM; LN cached in VMEM scratch.
# --------------------------------------------------------------------------

def _ffn_kernel(x_ref, g_ref, be_ref, w1_ref, b1_ref, w2_ref, b2_ref, o_ref,
                xn_ref, acc_ref, *, eps, compute_dtype):
    kk = pl.program_id(1)

    @pl.when(kk == 0)
    def _init():
        x = x_ref[...].astype(jnp.float32)
        mu = jnp.mean(x, axis=-1, keepdims=True)
        var = jnp.mean(jnp.square(x - mu), axis=-1, keepdims=True)
        xn = (x - mu) * lax.rsqrt(var + eps)
        xn_ref[...] = (xn * g_ref[...] + be_ref[...]).astype(compute_dtype)
        acc_ref[...] = jnp.zeros_like(acc_ref)

    t = jnp.dot(xn_ref[...], w1_ref[...].astype(compute_dtype),
                preferred_element_type=jnp.float32) + b1_ref[...].astype(jnp.float32)
    t = _gelu(t)
    acc_ref[...] += jnp.dot(t.astype(compute_dtype), w2_ref[...].astype(compute_dtype),
                            preferred_element_type=jnp.float32)

    @pl.when(kk == pl.num_programs(1) - 1)
    def _fin():
        o_ref[...] = (acc_ref[...] + b2_ref[...].astype(jnp.float32)
                      + x_ref[...].astype(jnp.float32)).astype(o_ref.dtype)


def ffn_block(x, gamma, beta, w1, b1, w2, b2, *, eps=LN_EPS,
              compute_dtype=MATMUL_COMPUTE_DTYPE):
    B, T, H = x.shape
    M = B * T
    KFF = w1.shape[1]
    tm = _tile(M, TM_TARGET, 8)
    tkf = _tile(KFF, TN_TARGET, 128)
    grid = (M // tm, KFF // tkf)

    out = pl.pallas_call(
        functools.partial(_ffn_kernel, eps=eps, compute_dtype=compute_dtype),
        out_shape=jax.ShapeDtypeStruct((M, H), jnp.float32),
        grid=grid,
        in_specs=[
            pl.BlockSpec((tm, H), lambda i, k: (i, 0)),      # x (LN input + residual)
            pl.BlockSpec((1, H), lambda i, k: (0, 0)),       # gamma
            pl.BlockSpec((1, H), lambda i, k: (0, 0)),       # beta
            pl.BlockSpec((H, tkf), lambda i, k: (0, k)),     # W1 slab
            pl.BlockSpec((1, tkf), lambda i, k: (0, k)),     # b1 slab
            pl.BlockSpec((tkf, H), lambda i, k: (k, 0)),     # W2 slab
            pl.BlockSpec((1, H), lambda i, k: (0, 0)),       # b2
        ],
        out_specs=pl.BlockSpec((tm, H), lambda i, k: (i, 0)),
        scratch_shapes=[pltpu.VMEM((tm, H), compute_dtype),   # cached LN(x)
                        pltpu.VMEM((tm, H), jnp.float32)],    # FF2 accumulator
        compiler_params=pltpu.CompilerParams(
            dimension_semantics=("parallel", "arbitrary"),
            vmem_limit_bytes=_VMEM_LIMIT),
    )(x.reshape(M, H), gamma.reshape(1, H), beta.reshape(1, H),
      w1, b1.reshape(1, KFF), w2, b2.reshape(1, H))
    return out.reshape(B, T, H)


# --------------------------------------------------------------------------
# Deterministic parameter initialization (shapes from the module __init__)
# --------------------------------------------------------------------------

def _init_linear(key, fan_in, fan_out):
    kw, kb = jax.random.split(key)
    bound = 1.0 / math.sqrt(fan_in)
    return {
        "w": jax.random.uniform(kw, (fan_in, fan_out), jnp.float32, -bound, bound),
        "b": jax.random.uniform(kb, (fan_out,), jnp.float32, -bound, bound),
    }


def _positional_encoding(max_len, d_model):
    pos = np.arange(max_len, dtype=np.float32)[:, None]
    i = np.arange(0, d_model, 2, dtype=np.float32)[None, :]
    angle = pos / np.power(10000.0, i / float(d_model))
    pe = np.zeros((max_len, d_model), np.float32)
    pe[:, 0::2] = np.sin(angle)
    pe[:, 1::2] = np.cos(angle)
    return jnp.asarray(pe)


def init_params(key, num_features, hidden, n_layers, attn_heads, max_len):
    keys = jax.random.split(key, 2 + n_layers)
    params = {
        "embed": _init_linear(keys[0], num_features, hidden),     # InputEmbedding
        "pos_enc": _positional_encoding(max_len, hidden),         # PositionalEncoding
        "head": _init_linear(keys[1], hidden, num_features),      # MaskedTimeSeriesModel.linear
        "layers": [],
    }
    ff_hidden = hidden * 4
    for l in range(n_layers):
        kq, kk, kv, ko, kf1, kf2 = jax.random.split(keys[2 + l], 6)
        params["layers"].append({
            "ln1_g": jnp.ones((hidden,), jnp.float32),
            "ln1_b": jnp.zeros((hidden,), jnp.float32),
            "q": _init_linear(kq, hidden, hidden),
            "k": _init_linear(kk, hidden, hidden),
            "v": _init_linear(kv, hidden, hidden),
            "o": _init_linear(ko, hidden, hidden),
            "ln2_g": jnp.ones((hidden,), jnp.float32),
            "ln2_b": jnp.zeros((hidden,), jnp.float32),
            "ff1": _init_linear(kf1, hidden, ff_hidden),
            "ff2": _init_linear(kf2, ff_hidden, hidden),
        })
    return params


# --------------------------------------------------------------------------
# Forward pass: TVTSBERTPrediction.forward(x, mask)
# --------------------------------------------------------------------------

def tvtsbert_prediction_forward(params, x, mask, *, n_layers, attn_heads):
    B, T, F = x.shape
    H = params["embed"]["w"].shape[1]

    # --- TVTSBERT embedding: Linear(F -> H) with positional encoding fused in the epilogue ---
    pe = params["pos_enc"][:T]
    h = linear(x, params["embed"]["w"], params["embed"]["b"], pos_enc=(pe, T))   # f32 residual stream

    # --- attention key mask: scores.masked_fill(mask == 0, -1e9) ---
    bias = jnp.where(mask > 0, 0.0, -1e9).astype(jnp.float32).reshape(B, 1, T)

    for l in range(n_layers):
        p = params["layers"][l]

        # self-attention sublayer (pre-LN residual; dropout = identity in eval)
        q, k, v = ln_qkv(h, p["ln1_g"], p["ln1_b"],
                         p["q"]["w"], p["q"]["b"],
                         p["k"]["w"], p["k"]["b"],
                         p["v"]["w"], p["v"]["b"])                # bf16 activations
        attn = flash_attention(q, k, v, bias, heads=attn_heads)   # (B, T, H) bf16
        h = linear(attn, p["o"]["w"], p["o"]["b"], residual=h)    # out-proj + residual, f32

        # position-wise feed-forward sublayer, fully fused (no 4H intermediate in HBM)
        h = ffn_block(h, p["ln2_g"], p["ln2_b"],
                      p["ff1"]["w"], p["ff1"]["b"], p["ff2"]["w"], p["ff2"]["b"])

    # --- MaskedTimeSeriesModel: Linear(hidden -> num_features) ---
    # Pad the tiny output-feature dim to 128 lanes for lane-dense stores, slice afterwards.
    wh, bh = params["head"]["w"], params["head"]["b"]
    n_feat = wh.shape[1]
    pad = (-n_feat) % 128
    if pad:
        wh = jnp.pad(wh, ((0, 0), (0, pad)))
        bh = jnp.pad(bh, ((0, pad),))
    out = linear(h, wh, bh)
    return out[..., :n_feat]


# --------------------------------------------------------------------------

if __name__ == "__main__":
    B, T, NUM_FEATURES, HIDDEN = 2, 8, 4, 32
    N_LAYERS, ATTN_HEADS = 2, 4

    key = jax.random.PRNGKey(0)
    pkey, xkey, mkey = jax.random.split(key, 3)

    params = init_params(pkey, NUM_FEATURES, HIDDEN, N_LAYERS, ATTN_HEADS, max_len=T)
    x = jax.random.normal(xkey, (B, T, NUM_FEATURES), dtype=jnp.float32)
    mask = (jax.random.uniform(mkey, (B, T)) > 0.2).astype(jnp.int32)

    fwd = jax.jit(functools.partial(tvtsbert_prediction_forward,
                                    n_layers=N_LAYERS, attn_heads=ATTN_HEADS))
    out = fwd(params, x, mask)
    out = jax.block_until_ready(out)

    assert out.shape == (B, T, NUM_FEATURES) and out.dtype == jnp.float32
    assert bool(jnp.all(jnp.isfinite(out)))
    print("KERNEL_OK")
</pallas_src>

<mosaic_0001>
module attributes {stable_mosaic.version = 11 : i64} {
  func.func @_linear_kernel(%arg0: i32, %arg1: i32, %arg2: i32, %arg3: memref<8x4xf32, #tpu.memory_space<vmem>>, %arg4: memref<4x32xf32, #tpu.memory_space<vmem>>, %arg5: memref<1x32xf32, #tpu.memory_space<vmem>>, %arg6: memref<8x32xf32, #tpu.memory_space<vmem>>, %arg7: memref<8x32xf32, #tpu.memory_space<vmem>>) attributes {dimension_semantics = [#tpu.dimension_semantics<parallel>, #tpu.dimension_semantics<parallel>, #tpu.dimension_semantics<arbitrary>], iteration_bounds = array<i64: 2, 1, 1>, scalar_prefetch = 0 : i64, scratch_operands = 0 : i64, tpu.core_type = #tpu.core_type<tc>, window_params = [{transform_indices = @transform_0, window_bounds = array<i64: 8, 4>}, {transform_indices = @transform_1, window_bounds = array<i64: 4, 32>}, {transform_indices = @transform_2, window_bounds = array<i64: 1, 32>}, {transform_indices = @transform_3, window_bounds = array<i64: 8, 32>}, {transform_indices = @transform_4, window_bounds = array<i64: 8, 32>}]} {
    %c0 = arith.constant 0 : index
    %c0_0 = arith.constant 0 : index
    %0 = vector.load %arg3[%c0, %c0_0] : memref<8x4xf32, #tpu.memory_space<vmem>>, vector<8x4xf32>
    %1 = arith.truncf %0 : vector<8x4xf32> to vector<8x4xbf16>
    %c0_1 = arith.constant 0 : index
    %c0_2 = arith.constant 0 : index
    %2 = vector.load %arg4[%c0_1, %c0_2] : memref<4x32xf32, #tpu.memory_space<vmem>>, vector<4x32xf32>
    %3 = arith.truncf %2 : vector<4x32xf32> to vector<4x32xbf16>
    %cst = arith.constant dense<0.000000e+00> : vector<8x32xf32>
    %4 = tpu.matmul %1, %3, %cst {dimension_numbers = #tpu.dot_dimension_numbers<[1], [0], [0], [1], [0, 0, 1, 1], [], []>} : vector<8x4xbf16>, vector<4x32xbf16>, vector<8x32xf32> -> vector<8x32xf32>
    %c0_3 = arith.constant 0 : index
    %c0_4 = arith.constant 0 : index
    %5 = vector.load %arg5[%c0_3, %c0_4] : memref<1x32xf32, #tpu.memory_space<vmem>>, vector<1x32xf32>
    %6 = vector.broadcast %5 : vector<1x32xf32> to vector<8x32xf32>
    %7 = arith.addf %4, %6 : vector<8x32xf32>
    %c0_5 = arith.constant 0 : index
    %c0_6 = arith.constant 0 : index
    %8 = vector.load %arg6[%c0_5, %c0_6] : memref<8x32xf32, #tpu.memory_space<vmem>>, vector<8x32xf32>
    %9 = arith.addf %7, %8 : vector<8x32xf32>
    %c0_7 = arith.constant 0 : index
    %c0_8 = arith.constant 0 : index
    %10 = vector.load %arg7[%c0_7, %c0_8] : memref<8x32xf32, #tpu.memory_space<vmem>>, vector<8x32xf32>
    tpu.vector_store %arg7[%c0_7, %c0_8], %9 {strides = array<i32>} : memref<8x32xf32, #tpu.memory_space<vmem>>, vector<8x32xf32>,
    return
  }
  func.func @transform_0(%arg0: i32, %arg1: i32, %arg2: i32) -> (i32, i32) {
    %c0_i32 = arith.constant 0 : i32
    return %arg0, %arg2 : i32, i32
  }
  func.func @transform_1(%arg0: i32, %arg1: i32, %arg2: i32) -> (i32, i32) {
    %c0_i32 = arith.constant 0 : i32
    return %arg2, %arg1 : i32, i32
  }
  func.func @transform_2(%arg0: i32, %arg1: i32, %arg2: i32) -> (i32, i32) {
    %c0_i32 = arith.constant 0 : i32
    %c0_i32_0 = arith.constant 0 : i32
    return %c0_i32, %arg1 : i32, i32
  }
  func.func @transform_3(%arg0: i32, %arg1: i32, %arg2: i32) -> (i32, i32) {
    %c1_i32 = arith.constant 1 : i32
    %c0_i32 = arith.constant 0 : i32
    %0 = arith.cmpi eq, %c1_i32, %c0_i32 : i32
    %c1_i32_0 = arith.constant 1 : i32
    %1 = arith.select %0, %c1_i32_0, %c1_i32 : i32
    %2 = arith.remsi %arg0, %1 : i32
    %c0_i32_1 = arith.constant 0 : i32
    %3 = arith.cmpi ne, %2, %c0_i32_1 : i32
    %c0_i32_2 = arith.constant 0 : i32
    %4 = arith.cmpi slt, %2, %c0_i32_2 : i32
    %c0_i32_3 = arith.constant 0 : i32
    %5 = arith.cmpi slt, %1, %c0_i32_3 : i32
    %6 = arith.xori %4, %5 : i1
    %7 = arith.andi %6, %3 : i1
    %8 = arith.addi %2, %1 : i32
    %9 = arith.select %7, %8, %2 : i32
    %c0_i32_4 = arith.constant 0 : i32
    return %9, %arg1 : i32, i32
  }
  func.func @transform_4(%arg0: i32, %arg1: i32, %arg2: i32) -> (i32, i32) {
    %c0_i32 = arith.constant 0 : i32
    return %arg0, %arg1 : i32, i32
  }
}

module attributes {stable_mosaic.version = 11 : i64} {
  func.func @_ln_qkv_kernel(%arg0: i32, %arg1: memref<16x32xf32, #tpu.memory_space<vmem>>, %arg2: memref<1x32xf32, #tpu.memory_space<vmem>>, %arg3: memref<1x32xf32, #tpu.memory_space<vmem>>, %arg4: memref<32x32xf32, #tpu.memory_space<vmem>>, %arg5: memref<32x32xf32, #tpu.memory_space<vmem>>, %arg6: memref<32x32xf32, #tpu.memory_space<vmem>>, %arg7: memref<1x32xf32, #tpu.memory_space<vmem>>, %arg8: memref<1x32xf32, #tpu.memory_space<vmem>>, %arg9: memref<1x32xf32, #tpu.memory_space<vmem>>, %arg10: memref<16x32xbf16, #tpu.memory_space<vmem>>, %arg11: memref<16x32xbf16, #tpu.memory_space<vmem>>, %arg12: memref<16x32xbf16, #tpu.memory_space<vmem>>) attributes {dimension_semantics = [#tpu.dimension_semantics<parallel>], iteration_bounds = array<i64: 1>, scalar_prefetch = 0 : i64, scratch_operands = 0 : i64, tpu.core_type = #tpu.core_type<tc>, window_params = [{transform_indices = @transform_0, window_bounds = array<i64: 16, 32>}, {pipeline_mode = #tpu.pipeline_mode<synchronous>, transform_indices = @transform_1, window_bounds = array<i64: 1, 32>}, {pipeline_mode = #tpu.pipeline_mode<synchronous>, transform_indices = @transform_2, window_bounds = array<i64: 1, 32>}, {pipeline_mode = #tpu.pipeline_mode<synchronous>, transform_indices = @transform_3, window_bounds = array<i64: 32, 32>}, {pipeline_mode = #tpu.pipeline_mode<synchronous>, transform_indices = @transform_4, window_bounds = array<i64: 32, 32>}, {pipeline_mode = #tpu.pipeline_mode<synchronous>, transform_indices = @transform_5, window_bounds = array<i64: 32, 32>}, {pipeline_mode = #tpu.pipeline_mode<synchronous>, transform_indices = @transform_6, window_bounds = array<i64: 1, 32>}, {pipeline_mode = #tpu.pipeline_mode<synchronous>, transform_indices = @transform_7, window_bounds = array<i64: 1, 32>}, {pipeline_mode = #tpu.pipeline_mode<synchronous>, transform_indices = @transform_8, window_bounds = array<i64: 1, 32>}, {transform_indices = @transform_9, window_bounds = array<i64: 16, 32>}, {transform_indices = @transform_10, window_bounds = array<i64: 16, 32>}, {transform_indices = @transform_11, window_bounds = array<i64: 16, 32>}]} {
    %c0 = arith.constant 0 : index
    %c0_0 = arith.constant 0 : index
    %0 = vector.load %arg1[%c0, %c0_0] : memref<16x32xf32, #tpu.memory_space<vmem>>, vector<16x32xf32>
    %cst = arith.constant dense<0.000000e+00> : vector<16xf32>
    %1 = vector.multi_reduction <add>, %0, %cst [1] : vector<16x32xf32> to vector<16xf32>
    %2 = vector.shape_cast %1 : vector<16xf32> to vector<16x1xf32>
    %cst_1 = arith.constant 3.200000e+01 : f32
    %3 = vector.broadcast %cst_1 : f32 to vector<16x1xf32>
    %4 = arith.divf %2, %3 : vector<16x1xf32>
    %5 = vector.broadcast %4 : vector<16x1xf32> to vector<16x32xf32>
    %6 = arith.subf %0, %5 : vector<16x32xf32>
    %7 = arith.mulf %6, %6 : vector<16x32xf32>
    %cst_2 = arith.constant dense<0.000000e+00> : vector<16xf32>
    %8 = vector.multi_reduction <add>, %7, %cst_2 [1] : vector<16x32xf32> to vector<16xf32>
    %9 = vector.shape_cast %8 : vector<16xf32> to vector<16x1xf32>
    %cst_3 = arith.constant 3.200000e+01 : f32
    %10 = vector.broadcast %cst_3 : f32 to vector<16x1xf32>
    %11 = arith.divf %9, %10 : vector<16x1xf32>
    %12 = vector.broadcast %4 : vector<16x1xf32> to vector<16x32xf32>
    %13 = arith.subf %0, %12 : vector<16x32xf32>
    %cst_4 = arith.constant 9.99999997E-7 : f32
    %14 = vector.broadcast %cst_4 : f32 to vector<16x1xf32>
    %15 = arith.addf %11, %14 : vector<16x1xf32>
    %16 = math.rsqrt %15 : vector<16x1xf32>
    %17 = vector.broadcast %16 : vector<16x1xf32> to vector<16x32xf32>
    %18 = arith.mulf %13, %17 : vector<16x32xf32>
    %c0_5 = arith.constant 0 : index
    %c0_6 = arith.constant 0 : index
    %19 = vector.load %arg2[%c0_5, %c0_6] : memref<1x32xf32, #tpu.memory_space<vmem>>, vector<1x32xf32>
    %20 = vector.broadcast %19 : vector<1x32xf32> to vector<16x32xf32>
    %21 = arith.mulf %18, %20 : vector<16x32xf32>
    %c0_7 = arith.constant 0 : index
    %c0_8 = arith.constant 0 : index
    %22 = vector.load %arg3[%c0_7, %c0_8] : memref<1x32xf32, #tpu.memory_space<vmem>>, vector<1x32xf32>
    %23 = vector.broadcast %22 : vector<1x32xf32> to vector<16x32xf32>
    %24 = arith.addf %21, %23 : vector<16x32xf32>
    %25 = arith.truncf %24 : vector<16x32xf32> to vector<16x32xbf16>
    %c0_9 = arith.constant 0 : index
    %c0_10 = arith.constant 0 : index
    %26 = vector.load %arg4[%c0_9, %c0_10] : memref<32x32xf32, #tpu.memory_space<vmem>>, vector<32x32xf32>
    %27 = arith.truncf %26 : vector<32x32xf32> to vector<32x32xbf16>
    %cst_11 = arith.constant dense<0.000000e+00> : vector<16x32xf32>
    %28 = tpu.matmul %25, %27, %cst_11 {dimension_numbers = #tpu.dot_dimension_numbers<[1], [0], [0], [1], [0, 0, 1, 1], [], []>} : vector<16x32xbf16>, vector<32x32xbf16>, vector<16x32xf32> -> vector<16x32xf32>
    %c0_12 = arith.constant 0 : index
    %c0_13 = arith.constant 0 : index
    %29 = vector.load %arg7[%c0_12, %c0_13] : memref<1x32xf32, #tpu.memory_space<vmem>>, vector<1x32xf32>
    %30 = vector.broadcast %29 : vector<1x32xf32> to vector<16x32xf32>
    %31 = arith.addf %28, %30 : vector<16x32xf32>
    %32 = arith.truncf %31 : vector<16x32xf32> to vector<16x32xbf16>
    %c0_14 = arith.constant 0 : index
    %c0_15 = arith.constant 0 : index
    %33 = vector.load %arg10[%c0_14, %c0_15] : memref<16x32xbf16, #tpu.memory_space<vmem>>, vector<16x32xbf16>
    tpu.vector_store %arg10[%c0_14, %c0_15], %32 {strides = array<i32>} : memref<16x32xbf16, #tpu.memory_space<vmem>>, vector<16x32xbf16>,
    %c0_16 = arith.constant 0 : index
    %c0_17 = arith.constant 0 : index
    %34 = vector.load %arg5[%c0_16, %c0_17] : memref<32x32xf32, #tpu.memory_space<vmem>>, vector<32x32xf32>
    %35 = arith.truncf %34 : vector<32x32xf32> to vector<32x32xbf16>
    %cst_18 = arith.constant dense<0.000000e+00> : vector<16x32xf32>
    %36 = tpu.matmul %25, %35, %cst_18 {dimension_numbers = #tpu.dot_dimension_numbers<[1], [0], [0], [1], [0, 0, 1, 1], [], []>} : vector<16x32xbf16>, vector<32x32xbf16>, vector<16x32xf32> -> vector<16x32xf32>
    %c0_19 = arith.constant 0 : index
    %c0_20 = arith.constant 0 : index
    %37 = vector.load %arg8[%c0_19, %c0_20] : memref<1x32xf32, #tpu.memory_space<vmem>>, vector<1x32xf32>
    %38 = vector.broadcast %37 : vector<1x32xf32> to vector<16x32xf32>
    %39 = arith.addf %36, %38 : vector<16x32xf32>
    %40 = arith.truncf %39 : vector<16x32xf32> to vector<16x32xbf16>
    %c0_21 = arith.constant 0 : index
    %c0_22 = arith.constant 0 : index
    %41 = vector.load %arg11[%c0_21, %c0_22] : memref<16x32xbf16, #tpu.memory_space<vmem>>, vector<16x32xbf16>
    tpu.vector_store %arg11[%c0_21, %c0_22], %40 {strides = array<i32>} : memref<16x32xbf16, #tpu.memory_space<vmem>>, vector<16x32xbf16>,
    %c0_23 = arith.constant 0 : index
    %c0_24 = arith.constant 0 : index
    %42 = vector.load %arg6[%c0_23, %c0_24] : memref<32x32xf32, #tpu.memory_space<vmem>>, vector<32x32xf32>
    %43 = arith.truncf %42 : vector<32x32xf32> to vector<32x32xbf16>
    %cst_25 = arith.constant dense<0.000000e+00> : vector<16x32xf32>
    %44 = tpu.matmul %25, %43, %cst_25 {dimension_numbers = #tpu.dot_dimension_numbers<[1], [0], [0], [1], [0, 0, 1, 1], [], []>} : vector<16x32xbf16>, vector<32x32xbf16>, vector<16x32xf32> -> vector<16x32xf32>
    %c0_26 = arith.constant 0 : index
    %c0_27 = arith.constant 0 : index
    %45 = vector.load %arg9[%c0_26, %c0_27] : memref<1x32xf32, #tpu.memory_space<vmem>>, vector<1x32xf32>
    %46 = vector.broadcast %45 : vector<1x32xf32> to vector<16x32xf32>
    %47 = arith.addf %44, %46 : vector<16x32xf32>
    %48 = arith.truncf %47 : vector<16x32xf32> to vector<16x32xbf16>
    %c0_28 = arith.constant 0 : index
    %c0_29 = arith.constant 0 : index
    %49 = vector.load %arg12[%c0_28, %c0_29] : memref<16x32xbf16, #tpu.memory_space<vmem>>, vector<16x32xbf16>
    tpu.vector_store %arg12[%c0_28, %c0_29], %48 {strides = array<i32>} : memref<16x32xbf16, #tpu.memory_space<vmem>>, vector<16x32xbf16>,
    return
  }
  func.func @transform_0(%arg0: i32) -> (i32, i32) {
    %c0_i32 = arith.constant 0 : i32
    %c0_i32_0 = arith.constant 0 : i32
    return %arg0, %c0_i32 : i32, i32
  }
  func.func @transform_1(%arg0: i32) -> (i32, i32) {
    %c0_i32 = arith.constant 0 : i32
    %c0_i32_0 = arith.constant 0 : i32
    %c0_i32_1 = arith.constant 0 : i32
    return %c0_i32, %c0_i32_0 : i32, i32
  }
  func.func @transform_2(%arg0: i32) -> (i32, i32) {
    %c0_i32 = arith.constant 0 : i32
    %c0_i32_0 = arith.constant 0 : i32
    %c0_i32_1 = arith.constant 0 : i32
    return %c0_i32, %c0_i32_0 : i32, i32
  }
  func.func @transform_3(%arg0: i32) -> (i32, i32) {
    %c0_i32 = arith.constant 0 : i32
    %c0_i32_0 = arith.constant 0 : i32
    %c0_i32_1 = arith.constant 0 : i32
    return %c0_i32, %c0_i32_0 : i32, i32
  }
  func.func @transform_4(%arg0: i32) -> (i32, i32) {
    %c0_i32 = arith.constant 0 : i32
    %c0_i32_0 = arith.constant 0 : i32
    %c0_i32_1 = arith.constant 0 : i32
    return %c0_i32, %c0_i32_0 : i32, i32
  }
  func.func @transform_5(%arg0: i32) -> (i32, i32) {
    %c0_i32 = arith.constant 0 : i32
    %c0_i32_0 = arith.constant 0 : i32
    %c0_i32_1 = arith.constant 0 : i32
    return %c0_i32, %c0_i32_0 : i32, i32
  }
  func.func @transform_6(%arg0: i32) -> (i32, i32) {
    %c0_i32 = arith.constant 0 : i32
    %c0_i32_0 = arith.constant 0 : i32
    %c0_i32_1 = arith.constant 0 : i32
    return %c0_i32, %c0_i32_0 : i32, i32
  }
  func.func @transform_7(%arg0: i32) -> (i32, i32) {
    %c0_i32 = arith.constant 0 : i32
    %c0_i32_0 = arith.constant 0 : i32
    %c0_i32_1 = arith.constant 0 : i32
    return %c0_i32, %c0_i32_0 : i32, i32
  }
  func.func @transform_8(%arg0: i32) -> (i32, i32) {
    %c0_i32 = arith.constant 0 : i32
    %c0_i32_0 = arith.constant 0 : i32
    %c0_i32_1 = arith.constant 0 : i32
    return %c0_i32, %c0_i32_0 : i32, i32
  }
  func.func @transform_9(%arg0: i32) -> (i32, i32) {
    %c0_i32 = arith.constant 0 : i32
    %c0_i32_0 = arith.constant 0 : i32
    return %arg0, %c0_i32 : i32, i32
  }
  func.func @transform_10(%arg0: i32) -> (i32, i32) {
    %c0_i32 = arith.constant 0 : i32
    %c0_i32_0 = arith.constant 0 : i32
    return %arg0, %c0_i32 : i32, i32
  }
  func.func @transform_11(%arg0: i32) -> (i32, i32) {
    %c0_i32 = arith.constant 0 : i32
    %c0_i32_0 = arith.constant 0 : i32
    return %arg0, %c0_i32 : i32, i32
  }
}

module attributes {stable_mosaic.version = 11 : i64} {
  func.func @_linear_kernel(%arg0: i32, %arg1: i32, %arg2: i32, %arg3: memref<16x32xbf16, #tpu.memory_space<vmem>>, %arg4: memref<32x32xf32, #tpu.memory_space<vmem>>, %arg5: memref<1x32xf32, #tpu.memory_space<vmem>>, %arg6: memref<16x32xf32, #tpu.memory_space<vmem>>, %arg7: memref<16x32xf32, #tpu.memory_space<vmem>>) attributes {dimension_semantics = [#tpu.dimension_semantics<parallel>, #tpu.dimension_semantics<parallel>, #tpu.dimension_semantics<arbitrary>], iteration_bounds = array<i64: 1, 1, 1>, scalar_prefetch = 0 : i64, scratch_operands = 0 : i64, tpu.core_type = #tpu.core_type<tc>, window_params = [{transform_indices = @transform_0, window_bounds = array<i64: 16, 32>}, {transform_indices = @transform_1, window_bounds = array<i64: 32, 32>}, {transform_indices = @transform_2, window_bounds = array<i64: 1, 32>}, {transform_indices = @transform_3, window_bounds = array<i64: 16, 32>}, {transform_indices = @transform_4, window_bounds = array<i64: 16, 32>}]} {
    %c0 = arith.constant 0 : index
    %c0_0 = arith.constant 0 : index
    %0 = vector.load %arg3[%c0, %c0_0] : memref<16x32xbf16, #tpu.memory_space<vmem>>, vector<16x32xbf16>
    %c0_1 = arith.constant 0 : index
    %c0_2 = arith.constant 0 : index
    %1 = vector.load %arg4[%c0_1, %c0_2] : memref<32x32xf32, #tpu.memory_space<vmem>>, vector<32x32xf32>
    %2 = arith.truncf %1 : vector<32x32xf32> to vector<32x32xbf16>
    %cst = arith.constant dense<0.000000e+00> : vector<16x32xf32>
    %3 = tpu.matmul %0, %2, %cst {dimension_numbers = #tpu.dot_dimension_numbers<[1], [0], [0], [1], [0, 0, 1, 1], [], []>} : vector<16x32xbf16>, vector<32x32xbf16>, vector<16x32xf32> -> vector<16x32xf32>
    %c0_3 = arith.constant 0 : index
    %c0_4 = arith.constant 0 : index
    %4 = vector.load %arg5[%c0_3, %c0_4] : memref<1x32xf32, #tpu.memory_space<vmem>>, vector<1x32xf32>
    %5 = vector.broadcast %4 : vector<1x32xf32> to vector<16x32xf32>
    %6 = arith.addf %3, %5 : vector<16x32xf32>
    %c0_5 = arith.constant 0 : index
    %c0_6 = arith.constant 0 : index
    %7 = vector.load %arg6[%c0_5, %c0_6] : memref<16x32xf32, #tpu.memory_space<vmem>>, vector<16x32xf32>
    %8 = arith.addf %6, %7 : vector<16x32xf32>
    %c0_7 = arith.constant 0 : index
    %c0_8 = arith.constant 0 : index
    %9 = vector.load %arg7[%c0_7, %c0_8] : memref<16x32xf32, #tpu.memory_space<vmem>>, vector<16x32xf32>
    tpu.vector_store %arg7[%c0_7, %c0_8], %8 {strides = array<i32>} : memref<16x32xf32, #tpu.memory_space<vmem>>, vector<16x32xf32>,
    return
  }
  func.func @transform_0(%arg0: i32, %arg1: i32, %arg2: i32) -> (i32, i32) {
    %c0_i32 = arith.constant 0 : i32
    return %arg0, %arg2 : i32, i32
  }
  func.func @transform_1(%arg0: i32, %arg1: i32, %arg2: i32) -> (i32, i32) {
    %c0_i32 = arith.constant 0 : i32
    return %arg2, %arg1 : i32, i32
  }
  func.func @transform_2(%arg0: i32, %arg1: i32, %arg2: i32) -> (i32, i32) {
    %c0_i32 = arith.constant 0 : i32
    %c0_i32_0 = arith.constant 0 : i32
    return %c0_i32, %arg1 : i32, i32
  }
  func.func @transform_3(%arg0: i32, %arg1: i32, %arg2: i32) -> (i32, i32) {
    %c0_i32 = arith.constant 0 : i32
    return %arg0, %arg1 : i32, i32
  }
  func.func @transform_4(%arg0: i32, %arg1: i32, %arg2: i32) -> (i32, i32) {
    %c0_i32 = arith.constant 0 : i32
    return %arg0, %arg1 : i32, i32
  }
}

module attributes {stable_mosaic.version = 11 : i64} {
  func.func @_flash_attn_kernel(%arg0: i32, %arg1: i32, %arg2: i32, %arg3: memref<1x8x8xbf16, #tpu.memory_space<vmem>>, %arg4: memref<1x8x8xbf16, #tpu.memory_space<vmem>>, %arg5: memref<1x8x8xbf16, #tpu.memory_space<vmem>>, %arg6: memref<1x1x8xf32, #tpu.memory_space<vmem>>, %arg7: memref<1x8x8xbf16, #tpu.memory_space<vmem>>, %arg8: memref<8x1xf32, #tpu.memory_space<vmem>>, %arg9: memref<8x1xf32, #tpu.memory_space<vmem>>, %arg10: memref<8x8xf32, #tpu.memory_space<vmem>>) attributes {dimension_semantics = [#tpu.dimension_semantics<parallel>, #tpu.dimension_semantics<parallel>, #tpu.dimension_semantics<arbitrary>], iteration_bounds = array<i64: 8, 1, 1>, scalar_prefetch = 0 : i64, scratch_operands = 3 : i64, tpu.core_type = #tpu.core_type<tc>, window_params = [{transform_indices = @transform_0, window_bounds = array<i64: 1, 8, 8>}, {transform_indices = @transform_1, window_bounds = array<i64: 1, 8, 8>}, {transform_indices = @transform_2, window_bounds = array<i64: 1, 8, 8>}, {transform_indices = @transform_3, window_bounds = array<i64: 1, 1, 8>}, {transform_indices = @transform_4, window_bounds = array<i64: 1, 8, 8>}]} {
    %c0_i32 = arith.constant 0 : i32
    %0 = arith.cmpi eq, %arg2, %c0_i32 : i32
    %1 = arith.extui %0 : i1 to i32
    %c0_i32_0 = arith.constant 0 : i32
    %2 = arith.cmpi ne, %1, %c0_i32_0 : i32
    scf.if %2 {
      %cst_30 = arith.constant -1.000000e+30 : f32
      %42 = vector.broadcast %cst_30 : f32 to vector<8x1xf32>
      %c0_31 = arith.constant 0 : index
      %c0_32 = arith.constant 0 : index
      %43 = vector.load %arg8[%c0_31, %c0_32] : memref<8x1xf32, #tpu.memory_space<vmem>>, vector<8x1xf32>
      tpu.vector_store %arg8[%c0_31, %c0_32], %42 {strides = array<i32>} : memref<8x1xf32, #tpu.memory_space<vmem>>, vector<8x1xf32>,
      %cst_33 = arith.constant 0.000000e+00 : f32
      %44 = vector.broadcast %cst_33 : f32 to vector<8x1xf32>
      %c0_34 = arith.constant 0 : index
      %c0_35 = arith.constant 0 : index
      %45 = vector.load %arg9[%c0_34, %c0_35] : memref<8x1xf32, #tpu.memory_space<vmem>>, vector<8x1xf32>
      tpu.vector_store %arg9[%c0_34, %c0_35], %44 {strides = array<i32>} : memref<8x1xf32, #tpu.memory_space<vmem>>, vector<8x1xf32>,
      %cst_36 = arith.constant 0.000000e+00 : f32
      %46 = vector.broadcast %cst_36 : f32 to vector<8x8xf32>
      %c0_37 = arith.constant 0 : index
      %c0_38 = arith.constant 0 : index
      %47 = vector.load %arg10[%c0_37, %c0_38] : memref<8x8xf32, #tpu.memory_space<vmem>>, vector<8x8xf32>
      tpu.vector_store %arg10[%c0_37, %c0_38], %46 {strides = array<i32>} : memref<8x8xf32, #tpu.memory_space<vmem>>, vector<8x8xf32>,
    } else {
    }
    %c0 = arith.constant 0 : index
    %c0_1 = arith.constant 0 : index
    %c0_2 = arith.constant 0 : index
    %3 = vector.load %arg3[%c0, %c0_1, %c0_2] : memref<1x8x8xbf16, #tpu.memory_space<vmem>>, vector<1x8x8xbf16>
    %4 = vector.shape_cast %3 : vector<1x8x8xbf16> to vector<8x8xbf16>
    %c0_3 = arith.constant 0 : index
    %c0_4 = arith.constant 0 : index
    %c0_5 = arith.constant 0 : index
    %5 = vector.load %arg4[%c0_3, %c0_4, %c0_5] : memref<1x8x8xbf16, #tpu.memory_space<vmem>>, vector<1x8x8xbf16>
    %6 = vector.shape_cast %5 : vector<1x8x8xbf16> to vector<8x8xbf16>
    %cst = arith.constant dense<0.000000e+00> : vector<8x8xf32>
    %7 = tpu.matmul %4, %6, %cst {dimension_numbers = #tpu.dot_dimension_numbers<[1], [1], [0], [0], [0, 0, 1, 0], [], []>} : vector<8x8xbf16>, vector<8x8xbf16>, vector<8x8xf32> -> vector<8x8xf32>
    %cst_6 = arith.constant 0.353553385 : f32
    %8 = vector.broadcast %cst_6 : f32 to vector<8x8xf32>
    %9 = arith.mulf %7, %8 : vector<8x8xf32>
    %c0_7 = arith.constant 0 : index
    %c0_8 = arith.constant 0 : index
    %c0_9 = arith.constant 0 : index
    %10 = vector.load %arg6[%c0_7, %c0_8, %c0_9] : memref<1x1x8xf32, #tpu.memory_space<vmem>>, vector<1x1x8xf32>
    %11 = vector.shape_cast %10 : vector<1x1x8xf32> to vector<1x8xf32>
    %12 = vector.broadcast %11 : vector<1x8xf32> to vector<8x8xf32>
    %13 = arith.addf %9, %12 : vector<8x8xf32>
    %c0_10 = arith.constant 0 : index
    %c0_11 = arith.constant 0 : index
    %14 = vector.load %arg8[%c0_10, %c0_11] : memref<8x1xf32, #tpu.memory_space<vmem>>, vector<8x1xf32>
    %cst_12 = arith.constant dense<0xFF800000> : vector<8xf32>
    %15 = vector.multi_reduction <maximumf>, %13, %cst_12 [1] : vector<8x8xf32> to vector<8xf32>
    %16 = vector.shape_cast %15 : vector<8xf32> to vector<8x1xf32>
    %17 = arith.maximumf %14, %16 : vector<8x1xf32>
    %18 = arith.subf %14, %17 : vector<8x1xf32>
    %19 = math.exp %18 : vector<8x1xf32>
    %20 = vector.broadcast %17 : vector<8x1xf32> to vector<8x8xf32>
    %21 = arith.subf %13, %20 : vector<8x8xf32>
    %22 = math.exp %21 : vector<8x8xf32>
    %c0_13 = arith.constant 0 : index
    %c0_14 = arith.constant 0 : index
    %23 = vector.load %arg9[%c0_13, %c0_14] : memref<8x1xf32, #tpu.memory_space<vmem>>, vector<8x1xf32>
    %24 = arith.mulf %19, %23 : vector<8x1xf32>
    %cst_15 = arith.constant dense<0.000000e+00> : vector<8xf32>
    %25 = vector.multi_reduction <add>, %22, %cst_15 [1] : vector<8x8xf32> to vector<8xf32>
    %26 = vector.shape_cast %25 : vector<8xf32> to vector<8x1xf32>
    %27 = arith.addf %24, %26 : vector<8x1xf32>
    %c0_16 = arith.constant 0 : index
    %c0_17 = arith.constant 0 : index
    %28 = vector.load %arg9[%c0_16, %c0_17] : memref<8x1xf32, #tpu.memory_space<vmem>>, vector<8x1xf32>
    tpu.vector_store %arg9[%c0_16, %c0_17], %27 {strides = array<i32>} : memref<8x1xf32, #tpu.memory_space<vmem>>, vector<8x1xf32>,
    %c0_18 = arith.constant 0 : index
    %c0_19 = arith.constant 0 : index
    %29 = vector.load %arg10[%c0_18, %c0_19] : memref<8x8xf32, #tpu.memory_space<vmem>>, vector<8x8xf32>
    %30 = vector.broadcast %19 : vector<8x1xf32> to vector<8x8xf32>
    %31 = arith.mulf %30, %29 : vector<8x8xf32>
    %32 = arith.truncf %22 : vector<8x8xf32> to vector<8x8xbf16>
    %c0_20 = arith.constant 0 : index
    %c0_21 = arith.constant 0 : index
    %c0_22 = arith.constant 0 : index
    %33 = vector.load %arg5[%c0_20, %c0_21, %c0_22] : memref<1x8x8xbf16, #tpu.memory_space<vmem>>, vector<1x8x8xbf16>
    %34 = vector.shape_cast %33 : vector<1x8x8xbf16> to vector<8x8xbf16>
    %cst_23 = arith.constant dense<0.000000e+00> : vector<8x8xf32>
    %35 = tpu.matmul %32, %34, %cst_23 {dimension_numbers = #tpu.dot_dimension_numbers<[1], [0], [0], [1], [0, 0, 1, 1], [], []>} : vector<8x8xbf16>, vector<8x8xbf16>, vector<8x8xf32> -> vector<8x8xf32>
    %36 = arith.addf %31, %35 : vector<8x8xf32>
    %c0_24 = arith.constant 0 : index
    %c0_25 = arith.constant 0 : index
    %37 = vector.load %arg10[%c0_24, %c0_25] : memref<8x8xf32, #tpu.memory_space<vmem>>, vector<8x8xf32>
    tpu.vector_store %arg10[%c0_24, %c0_25], %36 {strides = array<i32>} : memref<8x8xf32, #tpu.memory_space<vmem>>, vector<8x8xf32>,
    %c0_26 = arith.constant 0 : index
    %c0_27 = arith.constant 0 : index
    %38 = vector.load %arg8[%c0_26, %c0_27] : memref<8x1xf32, #tpu.memory_space<vmem>>, vector<8x1xf32>
    tpu.vector_store %arg8[%c0_26, %c0_27], %17 {strides = array<i32>} : memref<8x1xf32, #tpu.memory_space<vmem>>, vector<8x1xf32>,
    %c0_i32_28 = arith.constant 0 : i32
    %39 = arith.cmpi eq, %arg2, %c0_i32_28 : i32
    %40 = arith.extui %39 : i1 to i32
    %c0_i32_29 = arith.constant 0 : i32
    %41 = arith.cmpi ne, %40, %c0_i32_29 : i32
    scf.if %41 {
      %c0_30 = arith.constant 0 : index
      %c0_31 = arith.constant 0 : index
      %42 = vector.load %arg10[%c0_30, %c0_31] : memref<8x8xf32, #tpu.memory_space<vmem>>, vector<8x8xf32>
      %c0_32 = arith.constant 0 : index
      %c0_33 = arith.constant 0 : index
      %43 = vector.load %arg9[%c0_32, %c0_33] : memref<8x1xf32, #tpu.memory_space<vmem>>, vector<8x1xf32>
      %44 = tpu.reciprocal %43 {approx = true} : vector<8x1xf32> -> vector<8x1xf32>
      %45 = vector.broadcast %44 : vector<8x1xf32> to vector<8x8xf32>
      %46 = arith.mulf %42, %45 : vector<8x8xf32>
      %47 = arith.truncf %46 : vector<8x8xf32> to vector<8x8xbf16>
      %c0_34 = arith.constant 0 : index
      %c0_35 = arith.constant 0 : index
      %c0_36 = arith.constant 0 : index
      %48 = vector.load %arg7[%c0_34, %c0_35, %c0_36] : memref<1x8x8xbf16, #tpu.memory_space<vmem>>, vector<1x8x8xbf16>
      %49 = vector.shape_cast %48 : vector<1x8x8xbf16> to vector<8x8xbf16>
      %50 = vector.shape_cast %47 : vector<8x8xbf16> to vector<1x8x8xbf16>
      tpu.vector_store %arg7[%c0_34, %c0_35, %c0_36], %50 {strides = array<i32>} : memref<1x8x8xbf16, #tpu.memory_space<vmem>>, vector<1x8x8xbf16>,
    } else {
    }
    return
  }
  func.func @transform_0(%arg0: i32, %arg1: i32, %arg2: i32) -> (i32, i32, i32) {
    %c0_i32 = arith.constant 0 : i32
    %c0_i32_0 = arith.constant 0 : i32
    return %arg0, %arg1, %c0_i32 : i32, i32, i32
  }
  func.func @transform_1(%arg0: i32, %arg1: i32, %arg2: i32) -> (i32, i32, i32) {
    %c0_i32 = arith.constant 0 : i32
    %c0_i32_0 = arith.constant 0 : i32
    return %arg0, %arg2, %c0_i32 : i32, i32, i32
  }
  func.func @transform_2(%arg0: i32, %arg1: i32, %arg2: i32) -> (i32, i32, i32) {
    %c0_i32 = arith.constant 0 : i32
    %c0_i32_0 = arith.constant 0 : i32
    return %arg0, %arg2, %c0_i32 : i32, i32, i32
  }
  func.func @transform_3(%arg0: i32, %arg1: i32, %arg2: i32) -> (i32, i32, i32) {
    %c0_i32 = arith.constant 0 : i32
    %c0_i32_0 = arith.constant 0 : i32
    return %arg0, %c0_i32, %arg2 : i32, i32, i32
  }
  func.func @transform_4(%arg0: i32, %arg1: i32, %arg2: i32) -> (i32, i32, i32) {
    %c0_i32 = arith.constant 0 : i32
    %c0_i32_0 = arith.constant 0 : i32
    return %arg0, %arg1, %c0_i32 : i32, i32, i32
  }
}

module attributes {stable_mosaic.version = 11 : i64} {
  func.func @_ffn_kernel(%arg0: i32, %arg1: i32, %arg2: memref<16x32xf32, #tpu.memory_space<vmem>>, %arg3: memref<1x32xf32, #tpu.memory_space<vmem>>, %arg4: memref<1x32xf32, #tpu.memory_space<vmem>>, %arg5: memref<32x128xf32, #tpu.memory_space<vmem>>, %arg6: memref<1x128xf32, #tpu.memory_space<vmem>>, %arg7: memref<128x32xf32, #tpu.memory_space<vmem>>, %arg8: memref<1x32xf32, #tpu.memory_space<vmem>>, %arg9: memref<16x32xf32, #tpu.memory_space<vmem>>, %arg10: memref<16x32xbf16, #tpu.memory_space<vmem>>, %arg11: memref<16x32xf32, #tpu.memory_space<vmem>>) attributes {dimension_semantics = [#tpu.dimension_semantics<parallel>, #tpu.dimension_semantics<arbitrary>], iteration_bounds = array<i64: 1, 1>, scalar_prefetch = 0 : i64, scratch_operands = 2 : i64, tpu.core_type = #tpu.core_type<tc>, window_params = [{transform_indices = @transform_0, window_bounds = array<i64: 16, 32>}, {pipeline_mode = #tpu.pipeline_mode<synchronous>, transform_indices = @transform_1, window_bounds = array<i64: 1, 32>}, {pipeline_mode = #tpu.pipeline_mode<synchronous>, transform_indices = @transform_2, window_bounds = array<i64: 1, 32>}, {transform_indices = @transform_3, window_bounds = array<i64: 32, 128>}, {transform_indices = @transform_4, window_bounds = array<i64: 1, 128>}, {transform_indices = @transform_5, window_bounds = array<i64: 128, 32>}, {pipeline_mode = #tpu.pipeline_mode<synchronous>, transform_indices = @transform_6, window_bounds = array<i64: 1, 32>}, {transform_indices = @transform_7, window_bounds = array<i64: 16, 32>}]} {
    %c0_i32 = arith.constant 0 : i32
    %0 = arith.cmpi eq, %arg1, %c0_i32 : i32
    %1 = arith.extui %0 : i1 to i32
    %c0_i32_0 = arith.constant 0 : i32
    %2 = arith.cmpi ne, %1, %c0_i32_0 : i32
    scf.if %2 {
      %c0_19 = arith.constant 0 : index
      %c0_20 = arith.constant 0 : index
      %33 = vector.load %arg2[%c0_19, %c0_20] : memref<16x32xf32, #tpu.memory_space<vmem>>, vector<16x32xf32>
      %cst_21 = arith.constant dense<0.000000e+00> : vector<16xf32>
      %34 = vector.multi_reduction <add>, %33, %cst_21 [1] : vector<16x32xf32> to vector<16xf32>
      %35 = vector.shape_cast %34 : vector<16xf32> to vector<16x1xf32>
      %cst_22 = arith.constant 3.200000e+01 : f32
      %36 = vector.broadcast %cst_22 : f32 to vector<16x1xf32>
      %37 = arith.divf %35, %36 : vector<16x1xf32>
      %38 = vector.broadcast %37 : vector<16x1xf32> to vector<16x32xf32>
      %39 = arith.subf %33, %38 : vector<16x32xf32>
      %40 = arith.mulf %39, %39 : vector<16x32xf32>
      %cst_23 = arith.constant dense<0.000000e+00> : vector<16xf32>
      %41 = vector.multi_reduction <add>, %40, %cst_23 [1] : vector<16x32xf32> to vector<16xf32>
      %42 = vector.shape_cast %41 : vector<16xf32> to vector<16x1xf32>
      %cst_24 = arith.constant 3.200000e+01 : f32
      %43 = vector.broadcast %cst_24 : f32 to vector<16x1xf32>
      %44 = arith.divf %42, %43 : vector<16x1xf32>
      %45 = vector.broadcast %37 : vector<16x1xf32> to vector<16x32xf32>
      %46 = arith.subf %33, %45 : vector<16x32xf32>
      %cst_25 = arith.constant 9.99999997E-7 : f32
      %47 = vector.broadcast %cst_25 : f32 to vector<16x1xf32>
      %48 = arith.addf %44, %47 : vector<16x1xf32>
      %49 = math.rsqrt %48 : vector<16x1xf32>
      %50 = vector.broadcast %49 : vector<16x1xf32> to vector<16x32xf32>
      %51 = arith.mulf %46, %50 : vector<16x32xf32>
      %c0_26 = arith.constant 0 : index
      %c0_27 = arith.constant 0 : index
      %52 = vector.load %arg3[%c0_26, %c0_27] : memref<1x32xf32, #tpu.memory_space<vmem>>, vector<1x32xf32>
      %53 = vector.broadcast %52 : vector<1x32xf32> to vector<16x32xf32>
      %54 = arith.mulf %51, %53 : vector<16x32xf32>
      %c0_28 = arith.constant 0 : index
      %c0_29 = arith.constant 0 : index
      %55 = vector.load %arg4[%c0_28, %c0_29] : memref<1x32xf32, #tpu.memory_space<vmem>>, vector<1x32xf32>
      %56 = vector.broadcast %55 : vector<1x32xf32> to vector<16x32xf32>
      %57 = arith.addf %54, %56 : vector<16x32xf32>
      %58 = arith.truncf %57 : vector<16x32xf32> to vector<16x32xbf16>
      %c0_30 = arith.constant 0 : index
      %c0_31 = arith.constant 0 : index
      %59 = vector.load %arg10[%c0_30, %c0_31] : memref<16x32xbf16, #tpu.memory_space<vmem>>, vector<16x32xbf16>
      tpu.vector_store %arg10[%c0_30, %c0_31], %58 {strides = array<i32>} : memref<16x32xbf16, #tpu.memory_space<vmem>>, vector<16x32xbf16>,
      %cst_32 = arith.constant 0.000000e+00 : f32
      %60 = vector.broadcast %cst_32 : f32 to vector<16x32xf32>
      %c0_33 = arith.constant 0 : index
      %c0_34 = arith.constant 0 : index
      %61 = vector.load %arg11[%c0_33, %c0_34] : memref<16x32xf32, #tpu.memory_space<vmem>>, vector<16x32xf32>
      tpu.vector_store %arg11[%c0_33, %c0_34], %60 {strides = array<i32>} : memref<16x32xf32, #tpu.memory_space<vmem>>, vector<16x32xf32>,
    } else {
    }
    %c0 = arith.constant 0 : index
    %c0_1 = arith.constant 0 : index
    %3 = vector.load %arg10[%c0, %c0_1] : memref<16x32xbf16, #tpu.memory_space<vmem>>, vector<16x32xbf16>
    %c0_2 = arith.constant 0 : index
    %c0_3 = arith.constant 0 : index
    %4 = vector.load %arg5[%c0_2, %c0_3] : memref<32x128xf32, #tpu.memory_space<vmem>>, vector<32x128xf32>
    %5 = arith.truncf %4 : vector<32x128xf32> to vector<32x128xbf16>
    %cst = arith.constant dense<0.000000e+00> : vector<16x128xf32>
    %6 = tpu.matmul %3, %5, %cst {dimension_numbers = #tpu.dot_dimension_numbers<[1], [0], [0], [1], [0, 0, 1, 1], [], []>} : vector<16x32xbf16>, vector<32x128xbf16>, vector<16x128xf32> -> vector<16x128xf32>
    %c0_4 = arith.constant 0 : index
    %c0_5 = arith.constant 0 : index
    %7 = vector.load %arg6[%c0_4, %c0_5] : memref<1x128xf32, #tpu.memory_space<vmem>>, vector<1x128xf32>
    %8 = vector.broadcast %7 : vector<1x128xf32> to vector<16x128xf32>
    %9 = arith.addf %6, %8 : vector<16x128xf32>
    %cst_6 = arith.constant 5.000000e-01 : f32
    %10 = vector.broadcast %cst_6 : f32 to vector<16x128xf32>
    %11 = arith.mulf %10, %9 : vector<16x128xf32>
    %cst_7 = arith.constant 4.471500e-02 : f32
    %12 = vector.broadcast %cst_7 : f32 to vector<16x128xf32>
    %13 = arith.mulf %12, %9 : vector<16x128xf32>
    %14 = arith.mulf %13, %9 : vector<16x128xf32>
    %15 = arith.mulf %14, %9 : vector<16x128xf32>
    %16 = arith.addf %9, %15 : vector<16x128xf32>
    %cst_8 = arith.constant 0.797884583 : f32
    %17 = vector.broadcast %cst_8 : f32 to vector<16x128xf32>
    %18 = arith.mulf %17, %16 : vector<16x128xf32>
    %19 = math.tanh %18 : vector<16x128xf32>
    %cst_9 = arith.constant 1.000000e+00 : f32
    %20 = vector.broadcast %cst_9 : f32 to vector<16x128xf32>
    %21 = arith.addf %20, %19 : vector<16x128xf32>
    %22 = arith.mulf %11, %21 : vector<16x128xf32>
    %c0_10 = arith.constant 0 : index
    %c0_11 = arith.constant 0 : index
    %23 = vector.load %arg11[%c0_10, %c0_11] : memref<16x32xf32, #tpu.memory_space<vmem>>, vector<16x32xf32>
    %24 = arith.truncf %22 : vector<16x128xf32> to vector<16x128xbf16>
    %c0_12 = arith.constant 0 : index
    %c0_13 = arith.constant 0 : index
    %25 = vector.load %arg7[%c0_12, %c0_13] : memref<128x32xf32, #tpu.memory_space<vmem>>, vector<128x32xf32>
    %26 = arith.truncf %25 : vector<128x32xf32> to vector<128x32xbf16>
    %cst_14 = arith.constant dense<0.000000e+00> : vector<16x32xf32>
    %27 = tpu.matmul %24, %26, %cst_14 {dimension_numbers = #tpu.dot_dimension_numbers<[1], [0], [0], [1], [0, 0, 1, 1], [], []>} : vector<16x128xbf16>, vector<128x32xbf16>, vector<16x32xf32> -> vector<16x32xf32>
    %28 = arith.addf %23, %27 : vector<16x32xf32>
    %c0_15 = arith.constant 0 : index
    %c0_16 = arith.constant 0 : index
    %29 = vector.load %arg11[%c0_15, %c0_16] : memref<16x32xf32, #tpu.memory_space<vmem>>, vector<16x32xf32>
    tpu.vector_store %arg11[%c0_15, %c0_16], %28 {strides = array<i32>} : memref<16x32xf32, #tpu.memory_space<vmem>>, vector<16x32xf32>,
    %c0_i32_17 = arith.constant 0 : i32
    %30 = arith.cmpi eq, %arg1, %c0_i32_17 : i32
    %31 = arith.extui %30 : i1 to i32
    %c0_i32_18 = arith.constant 0 : i32
    %32 = arith.cmpi ne, %31, %c0_i32_18 : i32
    scf.if %32 {
      %c0_19 = arith.constant 0 : index
      %c0_20 = arith.constant 0 : index
      %33 = vector.load %arg11[%c0_19, %c0_20] : memref<16x32xf32, #tpu.memory_space<vmem>>, vector<16x32xf32>
      %c0_21 = arith.constant 0 : index
      %c0_22 = arith.constant 0 : index
      %34 = vector.load %arg8[%c0_21, %c0_22] : memref<1x32xf32, #tpu.memory_space<vmem>>, vector<1x32xf32>
      %35 = vector.broadcast %34 : vector<1x32xf32> to vector<16x32xf32>
      %36 = arith.addf %33, %35 : vector<16x32xf32>
      %c0_23 = arith.constant 0 : index
      %c0_24 = arith.constant 0 : index
      %37 = vector.load %arg2[%c0_23, %c0_24] : memref<16x32xf32, #tpu.memory_space<vmem>>, vector<16x32xf32>
      %38 = arith.addf %36, %37 : vector<16x32xf32>
      %c0_25 = arith.constant 0 : index
      %c0_26 = arith.constant 0 : index
      %39 = vector.load %arg9[%c0_25, %c0_26] : memref<16x32xf32, #tpu.memory_space<vmem>>, vector<16x32xf32>
      tpu.vector_store %arg9[%c0_25, %c0_26], %38 {strides = array<i32>} : memref<16x32xf32, #tpu.memory_space<vmem>>, vector<16x32xf32>,
    } else {
    }
    return
  }
  func.func @transform_0(%arg0: i32, %arg1: i32) -> (i32, i32) {
    %c0_i32 = arith.constant 0 : i32
    %c0_i32_0 = arith.constant 0 : i32
    return %arg0, %c0_i32 : i32, i32
  }
  func.func @transform_1(%arg0: i32, %arg1: i32) -> (i32, i32) {
    %c0_i32 = arith.constant 0 : i32
    %c0_i32_0 = arith.constant 0 : i32
    %c0_i32_1 = arith.constant 0 : i32
    return %c0_i32, %c0_i32_0 : i32, i32
  }
  func.func @transform_2(%arg0: i32, %arg1: i32) -> (i32, i32) {
    %c0_i32 = arith.constant 0 : i32
    %c0_i32_0 = arith.constant 0 : i32
    %c0_i32_1 = arith.constant 0 : i32
    return %c0_i32, %c0_i32_0 : i32, i32
  }
  func.func @transform_3(%arg0: i32, %arg1: i32) -> (i32, i32) {
    %c0_i32 = arith.constant 0 : i32
    %c0_i32_0 = arith.constant 0 : i32
    return %c0_i32, %arg1 : i32, i32
  }
  func.func @transform_4(%arg0: i32, %arg1: i32) -> (i32, i32) {
    %c0_i32 = arith.constant 0 : i32
    %c0_i32_0 = arith.constant 0 : i32
    return %c0_i32, %arg1 : i32, i32
  }
  func.func @transform_5(%arg0: i32, %arg1: i32) -> (i32, i32) {
    %c0_i32 = arith.constant 0 : i32
    %c0_i32_0 = arith.constant 0 : i32
    return %arg1, %c0_i32 : i32, i32
  }
  func.func @transform_6(%arg0: i32, %arg1: i32) -> (i32, i32) {
    %c0_i32 = arith.constant 0 : i32
    %c0_i32_0 = arith.constant 0 : i32
    %c0_i32_1 = arith.constant 0 : i32
    return %c0_i32, %c0_i32_0 : i32, i32
  }
  func.func @transform_7(%arg0: i32, %arg1: i32) -> (i32, i32) {
    %c0_i32 = arith.constant 0 : i32
    %c0_i32_0 = arith.constant 0 : i32
    return %arg0, %c0_i32 : i32, i32
  }
}

module attributes {stable_mosaic.version = 11 : i64} {
  func.func @_ln_qkv_kernel(%arg0: i32, %arg1: memref<16x32xf32, #tpu.memory_space<vmem>>, %arg2: memref<1x32xf32, #tpu.memory_space<vmem>>, %arg3: memref<1x32xf32, #tpu.memory_space<vmem>>, %arg4: memref<32x32xf32, #tpu.memory_space<vmem>>, %arg5: memref<32x32xf32, #tpu.memory_space<vmem>>, %arg6: memref<32x32xf32, #tpu.memory_space<vmem>>, %arg7: memref<1x32xf32, #tpu.memory_space<vmem>>, %arg8: memref<1x32xf32, #tpu.memory_space<vmem>>, %arg9: memref<1x32xf32, #tpu.memory_space<vmem>>, %arg10: memref<16x32xbf16, #tpu.memory_space<vmem>>, %arg11: memref<16x32xbf16, #tpu.memory_space<vmem>>, %arg12: memref<16x32xbf16, #tpu.memory_space<vmem>>) attributes {dimension_semantics = [#tpu.dimension_semantics<parallel>], iteration_bounds = array<i64: 1>, scalar_prefetch = 0 : i64, scratch_operands = 0 : i64, tpu.core_type = #tpu.core_type<tc>, window_params = [{transform_indices = @transform_0, window_bounds = array<i64: 16, 32>}, {pipeline_mode = #tpu.pipeline_mode<synchronous>, transform_indices = @transform_1, window_bounds = array<i64: 1, 32>}, {pipeline_mode = #tpu.pipeline_mode<synchronous>, transform_indices = @transform_2, window_bounds = array<i64: 1, 32>}, {pipeline_mode = #tpu.pipeline_mode<synchronous>, transform_indices = @transform_3, window_bounds = array<i64: 32, 32>}, {pipeline_mode = #tpu.pipeline_mode<synchronous>, transform_indices = @transform_4, window_bounds = array<i64: 32, 32>}, {pipeline_mode = #tpu.pipeline_mode<synchronous>, transform_indices = @transform_5, window_bounds = array<i64: 32, 32>}, {pipeline_mode = #tpu.pipeline_mode<synchronous>, transform_indices = @transform_6, window_bounds = array<i64: 1, 32>}, {pipeline_mode = #tpu.pipeline_mode<synchronous>, transform_indices = @transform_7, window_bounds = array<i64: 1, 32>}, {pipeline_mode = #tpu.pipeline_mode<synchronous>, transform_indices = @transform_8, window_bounds = array<i64: 1, 32>}, {transform_indices = @transform_9, window_bounds = array<i64: 16, 32>}, {transform_indices = @transform_10, window_bounds = array<i64: 16, 32>}, {transform_indices = @transform_11, window_bounds = array<i64: 16, 32>}]} {
    %c0 = arith.constant 0 : index
    %c0_0 = arith.constant 0 : index
    %0 = vector.load %arg1[%c0, %c0_0] : memref<16x32xf32, #tpu.memory_space<vmem>>, vector<16x32xf32>
    %cst = arith.constant dense<0.000000e+00> : vector<16xf32>
    %1 = vector.multi_reduction <add>, %0, %cst [1] : vector<16x32xf32> to vector<16xf32>
    %2 = vector.shape_cast %1 : vector<16xf32> to vector<16x1xf32>
    %cst_1 = arith.constant 3.200000e+01 : f32
    %3 = vector.broadcast %cst_1 : f32 to vector<16x1xf32>
    %4 = arith.divf %2, %3 : vector<16x1xf32>
    %5 = vector.broadcast %4 : vector<16x1xf32> to vector<16x32xf32>
    %6 = arith.subf %0, %5 : vector<16x32xf32>
    %7 = arith.mulf %6, %6 : vector<16x32xf32>
    %cst_2 = arith.constant dense<0.000000e+00> : vector<16xf32>
    %8 = vector.multi_reduction <add>, %7, %cst_2 [1] : vector<16x32xf32> to vector<16xf32>
    %9 = vector.shape_cast %8 : vector<16xf32> to vector<16x1xf32>
    %cst_3 = arith.constant 3.200000e+01 : f32
    %10 = vector.broadcast %cst_3 : f32 to vector<16x1xf32>
    %11 = arith.divf %9, %10 : vector<16x1xf32>
    %12 = vector.broadcast %4 : vector<16x1xf32> to vector<16x32xf32>
    %13 = arith.subf %0, %12 : vector<16x32xf32>
    %cst_4 = arith.constant 9.99999997E-7 : f32
    %14 = vector.broadcast %cst_4 : f32 to vector<16x1xf32>
    %15 = arith.addf %11, %14 : vector<16x1xf32>
    %16 = math.rsqrt %15 : vector<16x1xf32>
    %17 = vector.broadcast %16 : vector<16x1xf32> to vector<16x32xf32>
    %18 = arith.mulf %13, %17 : vector<16x32xf32>
    %c0_5 = arith.constant 0 : index
    %c0_6 = arith.constant 0 : index
    %19 = vector.load %arg2[%c0_5, %c0_6] : memref<1x32xf32, #tpu.memory_space<vmem>>, vector<1x32xf32>
    %20 = vector.broadcast %19 : vector<1x32xf32> to vector<16x32xf32>
    %21 = arith.mulf %18, %20 : vector<16x32xf32>
    %c0_7 = arith.constant 0 : index
    %c0_8 = arith.constant 0 : index
    %22 = vector.load %arg3[%c0_7, %c0_8] : memref<1x32xf32, #tpu.memory_space<vmem>>, vector<1x32xf32>
    %23 = vector.broadcast %22 : vector<1x32xf32> to vector<16x32xf32>
    %24 = arith.addf %21, %23 : vector<16x32xf32>
    %25 = arith.truncf %24 : vector<16x32xf32> to vector<16x32xbf16>
    %c0_9 = arith.constant 0 : index
    %c0_10 = arith.constant 0 : index
    %26 = vector.load %arg4[%c0_9, %c0_10] : memref<32x32xf32, #tpu.memory_space<vmem>>, vector<32x32xf32>
    %27 = arith.truncf %26 : vector<32x32xf32> to vector<32x32xbf16>
    %cst_11 = arith.constant dense<0.000000e+00> : vector<16x32xf32>
    %28 = tpu.matmul %25, %27, %cst_11 {dimension_numbers = #tpu.dot_dimension_numbers<[1], [0], [0], [1], [0, 0, 1, 1], [], []>} : vector<16x32xbf16>, vector<32x32xbf16>, vector<16x32xf32> -> vector<16x32xf32>
    %c0_12 = arith.constant 0 : index
    %c0_13 = arith.constant 0 : index
    %29 = vector.load %arg7[%c0_12, %c0_13] : memref<1x32xf32, #tpu.memory_space<vmem>>, vector<1x32xf32>
    %30 = vector.broadcast %29 : vector<1x32xf32> to vector<16x32xf32>
    %31 = arith.addf %28, %30 : vector<16x32xf32>
    %32 = arith.truncf %31 : vector<16x32xf32> to vector<16x32xbf16>
    %c0_14 = arith.constant 0 : index
    %c0_15 = arith.constant 0 : index
    %33 = vector.load %arg10[%c0_14, %c0_15] : memref<16x32xbf16, #tpu.memory_space<vmem>>, vector<16x32xbf16>
    tpu.vector_store %arg10[%c0_14, %c0_15], %32 {strides = array<i32>} : memref<16x32xbf16, #tpu.memory_space<vmem>>, vector<16x32xbf16>,
    %c0_16 = arith.constant 0 : index
    %c0_17 = arith.constant 0 : index
    %34 = vector.load %arg5[%c0_16, %c0_17] : memref<32x32xf32, #tpu.memory_space<vmem>>, vector<32x32xf32>
    %35 = arith.truncf %34 : vector<32x32xf32> to vector<32x32xbf16>
    %cst_18 = arith.constant dense<0.000000e+00> : vector<16x32xf32>
    %36 = tpu.matmul %25, %35, %cst_18 {dimension_numbers = #tpu.dot_dimension_numbers<[1], [0], [0], [1], [0, 0, 1, 1], [], []>} : vector<16x32xbf16>, vector<32x32xbf16>, vector<16x32xf32> -> vector<16x32xf32>
    %c0_19 = arith.constant 0 : index
    %c0_20 = arith.constant 0 : index
    %37 = vector.load %arg8[%c0_19, %c0_20] : memref<1x32xf32, #tpu.memory_space<vmem>>, vector<1x32xf32>
    %38 = vector.broadcast %37 : vector<1x32xf32> to vector<16x32xf32>
    %39 = arith.addf %36, %38 : vector<16x32xf32>
    %40 = arith.truncf %39 : vector<16x32xf32> to vector<16x32xbf16>
    %c0_21 = arith.constant 0 : index
    %c0_22 = arith.constant 0 : index
    %41 = vector.load %arg11[%c0_21, %c0_22] : memref<16x32xbf16, #tpu.memory_space<vmem>>, vector<16x32xbf16>
    tpu.vector_store %arg11[%c0_21, %c0_22], %40 {strides = array<i32>} : memref<16x32xbf16, #tpu.memory_space<vmem>>, vector<16x32xbf16>,
    %c0_23 = arith.constant 0 : index
    %c0_24 = arith.constant 0 : index
    %42 = vector.load %arg6[%c0_23, %c0_24] : memref<32x32xf32, #tpu.memory_space<vmem>>, vector<32x32xf32>
    %43 = arith.truncf %42 : vector<32x32xf32> to vector<32x32xbf16>
    %cst_25 = arith.constant dense<0.000000e+00> : vector<16x32xf32>
    %44 = tpu.matmul %25, %43, %cst_25 {dimension_numbers = #tpu.dot_dimension_numbers<[1], [0], [0], [1], [0, 0, 1, 1], [], []>} : vector<16x32xbf16>, vector<32x32xbf16>, vector<16x32xf32> -> vector<16x32xf32>
    %c0_26 = arith.constant 0 : index
    %c0_27 = arith.constant 0 : index
    %45 = vector.load %arg9[%c0_26, %c0_27] : memref<1x32xf32, #tpu.memory_space<vmem>>, vector<1x32xf32>
    %46 = vector.broadcast %45 : vector<1x32xf32> to vector<16x32xf32>
    %47 = arith.addf %44, %46 : vector<16x32xf32>
    %48 = arith.truncf %47 : vector<16x32xf32> to vector<16x32xbf16>
    %c0_28 = arith.constant 0 : index
    %c0_29 = arith.constant 0 : index
    %49 = vector.load %arg12[%c0_28, %c0_29] : memref<16x32xbf16, #tpu.memory_space<vmem>>, vector<16x32xbf16>
    tpu.vector_store %arg12[%c0_28, %c0_29], %48 {strides = array<i32>} : memref<16x32xbf16, #tpu.memory_space<vmem>>, vector<16x32xbf16>,
    return
  }
  func.func @transform_0(%arg0: i32) -> (i32, i32) {
    %c0_i32 = arith.constant 0 : i32
    %c0_i32_0 = arith.constant 0 : i32
    return %arg0, %c0_i32 : i32, i32
  }
  func.func @transform_1(%arg0: i32) -> (i32, i32) {
    %c0_i32 = arith.constant 0 : i32
    %c0_i32_0 = arith.constant 0 : i32
    %c0_i32_1 = arith.constant 0 : i32
    return %c0_i32, %c0_i32_0 : i32, i32
  }
  func.func @transform_2(%arg0: i32) -> (i32, i32) {
    %c0_i32 = arith.constant 0 : i32
    %c0_i32_0 = arith.constant 0 : i32
    %c0_i32_1 = arith.constant 0 : i32
    return %c0_i32, %c0_i32_0 : i32, i32
  }
  func.func @transform_3(%arg0: i32) -> (i32, i32) {
    %c0_i32 = arith.constant 0 : i32
    %c0_i32_0 = arith.constant 0 : i32
    %c0_i32_1 = arith.constant 0 : i32
    return %c0_i32, %c0_i32_0 : i32, i32
  }
  func.func @transform_4(%arg0: i32) -> (i32, i32) {
    %c0_i32 = arith.constant 0 : i32
    %c0_i32_0 = arith.constant 0 : i32
    %c0_i32_1 = arith.constant 0 : i32
    return %c0_i32, %c0_i32_0 : i32, i32
  }
  func.func @transform_5(%arg0: i32) -> (i32, i32) {
    %c0_i32 = arith.constant 0 : i32
    %c0_i32_0 = arith.constant 0 : i32
    %c0_i32_1 = arith.constant 0 : i32
    return %c0_i32, %c0_i32_0 : i32, i32
  }
  func.func @transform_6(%arg0: i32) -> (i32, i32) {
    %c0_i32 = arith.constant 0 : i32
    %c0_i32_0 = arith.constant 0 : i32
    %c0_i32_1 = arith.constant 0 : i32
    return %c0_i32, %c0_i32_0 : i32, i32
  }
  func.func @transform_7(%arg0: i32) -> (i32, i32) {
    %c0_i32 = arith.constant 0 : i32
    %c0_i32_0 = arith.constant 0 : i32
    %c0_i32_1 = arith.constant 0 : i32
    return %c0_i32, %c0_i32_0 : i32, i32
  }
  func.func @transform_8(%arg0: i32) -> (i32, i32) {
    %c0_i32 = arith.constant 0 : i32
    %c0_i32_0 = arith.constant 0 : i32
    %c0_i32_1 = arith.constant 0 : i32
    return %c0_i32, %c0_i32_0 : i32, i32
  }
  func.func @transform_9(%arg0: i32) -> (i32, i32) {
    %c0_i32 = arith.constant 0 : i32
    %c0_i32_0 = arith.constant 0 : i32
    return %arg0, %c0_i32 : i32, i32
  }
  func.func @transform_10(%arg0: i32) -> (i32, i32) {
    %c0_i32 = arith.constant 0 : i32
    %c0_i32_0 = arith.constant 0 : i32
    return %arg0, %c0_i32 : i32, i32
  }
  func.func @transform_11(%arg0: i32) -> (i32, i32) {
    %c0_i32 = arith.constant 0 : i32
    %c0_i32_0 = arith.constant 0 : i32
    return %arg0, %c0_i32 : i32, i32
  }
}

module attributes {stable_mosaic.version = 11 : i64} {
  func.func @_linear_kernel(%arg0: i32, %arg1: i32, %arg2: i32, %arg3: memref<16x32xf32, #tpu.memory_space<vmem>>, %arg4: memref<32x128xf32, #tpu.memory_space<vmem>>, %arg5: memref<1x128xf32, #tpu.memory_space<vmem>>, %arg6: memref<16x128xf32, #tpu.memory_space<vmem>>) attributes {dimension_semantics = [#tpu.dimension_semantics<parallel>, #tpu.dimension_semantics<parallel>, #tpu.dimension_semantics<arbitrary>], iteration_bounds = array<i64: 1, 1, 1>, scalar_prefetch = 0 : i64, scratch_operands = 0 : i64, tpu.core_type = #tpu.core_type<tc>, window_params = [{transform_indices = @transform_0, window_bounds = array<i64: 16, 32>}, {transform_indices = @transform_1, window_bounds = array<i64: 32, 128>}, {transform_indices = @transform_2, window_bounds = array<i64: 1, 128>}, {transform_indices = @transform_3, window_bounds = array<i64: 16, 128>}]} {
    %c0 = arith.constant 0 : index
    %c0_0 = arith.constant 0 : index
    %0 = vector.load %arg3[%c0, %c0_0] : memref<16x32xf32, #tpu.memory_space<vmem>>, vector<16x32xf32>
    %1 = arith.truncf %0 : vector<16x32xf32> to vector<16x32xbf16>
    %c0_1 = arith.constant 0 : index
    %c0_2 = arith.constant 0 : index
    %2 = vector.load %arg4[%c0_1, %c0_2] : memref<32x128xf32, #tpu.memory_space<vmem>>, vector<32x128xf32>
    %3 = arith.truncf %2 : vector<32x128xf32> to vector<32x128xbf16>
    %cst = arith.constant dense<0.000000e+00> : vector<16x128xf32>
    %4 = tpu.matmul %1, %3, %cst {dimension_numbers = #tpu.dot_dimension_numbers<[1], [0], [0], [1], [0, 0, 1, 1], [], []>} : vector<16x32xbf16>, vector<32x128xbf16>, vector<16x128xf32> -> vector<16x128xf32>
    %c0_3 = arith.constant 0 : index
    %c0_4 = arith.constant 0 : index
    %5 = vector.load %arg5[%c0_3, %c0_4] : memref<1x128xf32, #tpu.memory_space<vmem>>, vector<1x128xf32>
    %6 = vector.broadcast %5 : vector<1x128xf32> to vector<16x128xf32>
    %7 = arith.addf %4, %6 : vector<16x128xf32>
    %c0_5 = arith.constant 0 : index
    %c0_6 = arith.constant 0 : index
    %8 = vector.load %arg6[%c0_5, %c0_6] : memref<16x128xf32, #tpu.memory_space<vmem>>, vector<16x128xf32>
    tpu.vector_store %arg6[%c0_5, %c0_6], %7 {strides = array<i32>} : memref<16x128xf32, #tpu.memory_space<vmem>>, vector<16x128xf32>,
    return
  }
  func.func @transform_0(%arg0: i32, %arg1: i32, %arg2: i32) -> (i32, i32) {
    %c0_i32 = arith.constant 0 : i32
    return %arg0, %arg2 : i32, i32
  }
  func.func @transform_1(%arg0: i32, %arg1: i32, %arg2: i32) -> (i32, i32) {
    %c0_i32 = arith.constant 0 : i32
    return %arg2, %arg1 : i32, i32
  }
  func.func @transform_2(%arg0: i32, %arg1: i32, %arg2: i32) -> (i32, i32) {
    %c0_i32 = arith.constant 0 : i32
    %c0_i32_0 = arith.constant 0 : i32
    return %c0_i32, %arg1 : i32, i32
  }
  func.func @transform_3(%arg0: i32, %arg1: i32, %arg2: i32) -> (i32, i32) {
    %c0_i32 = arith.constant 0 : i32
    return %arg0, %arg1 : i32, i32
  }
}

</mosaic_0001>

<bundles_post_ra>
// kernel: tvtsbert_prediction_forward.10
= control target key start
LH: loop header
LB: loop body
LE: loop exit
PB: predicated region body
PF: predicated region fallthrough
CT: control target
= control target key end

     0   :  { %s534_s15 = smov 0   ;;  %s536_s16 = smov 0   ;;  %s573_s0 = inlined_call_operand.vmem [shape: f32[16,4], index: 0, kind: input, shape index: {}]   ;;  %s574_s1 = inlined_call_operand.vmem [shape: f32[4,32], index: 1, kind: input, shape index: {}]   ;;  %s575_s2 = inlined_call_operand.vmem [shape: f32[1,32], index: 2, kind: input, shape index: {}]   ;;  %s576_s3 = inlined_call_operand.vmem [shape: f32[8,32], index: 3, kind: input, shape index: {}]   ;;  %s577_s4 = inlined_call_operand.vmem [shape: f32[16,32], index: 4, kind: output, shape index: {}]  }
   0x1   :  { %s538_s17 = smov 0  }
   0x2 LB: > { %s33_s18 = sadd.s32 1, %s503_s16  ;;  %p454_p0 = scmp.ge.s32.totalorder %s507_s17, 1  ;;  %s507_s17 = sphi %s538_s17, %s14_s17   ;;  %s503_s16 = sphi %s536_s16, %s579_s16   ;;  %s499_s15 = sphi %s534_s15, %s578_s15  }
   0x3   : > { %p35_p1 = scmp.ge.s32.totalorder %s33_s18, 2  ;;  %p218_p2 = scmp.lt.s32.totalorder %s507_s17, 3 }
   0x5   : > { %s581_s18 = smov (%p35_p1, %s33_s18), 0  ;;  %p219_p3 = pnand %p454_p0, %p218_p2 }
   0x6   : > { %p262_p4 = scmp.lt.s32.totalorder (!%p219_p3), %s499_s15, 1 }
   0x7   : > { %222 = sbr.rel (%p219_p3) target bundleno = 153 (0x99), region = 36 }
   0xc   : > { %v293_v0 = vld [vmem:[%s574_s1] sm:$0xf]  ;;  %vm303_vm0 = vcmask 1041408   ;;  %s583_s15 = smov (!%p262_p4, %s499_s15), 1  ;;  %vm299_vm1 = vcmask 31744   ;;  %vm322_vm2 = vcmask 261120  }
   0xd   : > { %v294_v1 = vpack.c.bf16 %v293_v0, %v293_v0  ;;  %s455_s21 = sshll.u32 %s583_s15, 3  ;;  %v484_v5 = vld [vmem:[%s575_s2] ss:$0 sm:$0xff] }
   0xe   : > { %s268_s24 = scalar_lea.vmem %s573_s0, %s455_s21  ;;  %v320_v7 = vld [vmem:[%s576_s3] sm:$0xff]  ;;  %s289_s5 = scalar_lea.vmem %s577_s4, %s455_s21 }
   0xf   : > { %v305_v2 = vsel %vm303_vm0, %v294_v1, 0  ;;  %v291_v3 = vld [vmem:[%s268_s24] sm:$0xff] }
  0x10   : > { %314 = vmatpush.bf16.msra.mxu0 %v305_v2  ;;  %v292_v4 = vpack.c.bf16 %v291_v3, %v291_v3 }
  0x13   : > { %457 = vmatmul.msk.bf16.vlgmr.msra.gmra.mxu0 %vm299_vm1, %v292_v4 }
  0x90   : > { %v316_v6 = vpop.f32.mrf.mxu0 }
  0x91   : > { %v317_v8 = vadd.f32 %v484_v5, %v316_v6 }
  0x93   : > { %v321_v9 = vadd.f32 %v320_v7, %v317_v8 }
  0x95   : > { %323 = vst.msk [vmem:[%s289_s5] sm:$0xff] %vm322_vm2, %v321_v9 }
  0x98   : > { %v318_v10 = vpop.f32.mrf.mxu0 }
  0x99 PF: > { %s14_s17 = sadd.s32 1, %s507_s17   ;;  %s578_s15 = smov %s503_s16 }
  0x9a   : > { %p11_p5 = scmp.ge.s32.totalorder %s14_s17, 4   ;;  %s579_s16 = smov %s581_s18 }
  0x9c   :  { %13 = sbr.rel (!%p11_p5) target bundleno = 2 (0x2), region = 75 }

// kernel: tvtsbert_prediction_forward.11
= control target key start
LH: loop header
LB: loop body
LE: loop exit
PB: predicated region body
PF: predicated region fallthrough
CT: control target
= control target key end

     0   :  { %17 = vsyncpa [#allocation3], 0  ;;  %s443_s0 = inlined_call_operand.vmem [shape: f32[16,32], index: 0, kind: input, shape index: {}]   ;;  %s444_s1 = inlined_call_operand.vmem [shape: f32[1,32], index: 1, kind: input, shape index: {}]   ;;  %s445_s2 = inlined_call_operand.vmem [shape: f32[1,32], index: 2, kind: input, shape index: {}]   ;;  %s446_s3 = inlined_call_operand.vmem [shape: f32[32,32], index: 3, kind: input, shape index: {}]   ;;  %s447_s4 = inlined_call_operand.hbm [shape: f32[32,32], index: 4, kind: input, shape index: {}]   ;;  %s448_s5 = inlined_call_operand.hbm [shape: f32[32,32], index: 5, kind: input, shape index: {}]   ;;  %s449_s6 = inlined_call_operand.vmem [shape: f32[1,32], index: 6, kind: input, shape index: {}]   ;;  %s450_s7 = inlined_call_operand.vmem [shape: f32[1,32], index: 7, kind: input, shape index: {}]   ;;  %s451_s8 = inlined_call_operand.vmem [shape: f32[1,32], index: 8, kind: input, shape index: {}]   ;;  %s452_s9 = inlined_call_operand.vmem [shape: bf16[16,32], index: 9, kind: output, shape index: {0}]   ;;  %s453_s10 = inlined_call_operand.vmem [shape: bf16[16,32], index: 10, kind: output, shape index: {1}]   ;;  %s454_s11 = inlined_call_operand.vmem [shape: bf16[16,32], index: 11, kind: output, shape index: {2}]  }
   0x1   :  { %s31_s19 = sshll.u32 %s447_s4, 4  ;;  %s32_s19 = int_to_ptr.hbm [resolvable:$true] %s31_s19 }
   0x2   :  { %18 = vsyncpa [#allocation5], 0  ;;  %s308_s20 = smov [#allocation2]   ;;  %s44_s24 = sshll.u32 %s448_s5, 4  ;;  %s45_s24 = int_to_ptr.hbm [resolvable:$true] %s44_s24 }
   0x3   :  { %s33_s21 = sshll.u32 %s308_s20, 4  ;;  %s309_s25 = smov 128   ;;  %s34_s21 = int_to_ptr.vmem [resolvable:$true] %s33_s21 }
   0x4   :  { %s310_s26 = smov 8   ;;  %s311_s27 = smov [#allocation4]  }
   0x5   :  { %39 = dma.hbm_to_vmem [thread:$0]  %s32_s19, 512, %s34_s21, [#allocation3], %s309_s25, %s309_s25, %s310_s26  }
   0x6   :  { %s46_s28 = sshll.u32 %s311_s27, 4  ;;  %s47_s28 = int_to_ptr.vmem [resolvable:$true] %s46_s28 }
   0x7   :  { %52 = dma.hbm_to_vmem [thread:$0]  %s45_s24, 512, %s47_s28, [#allocation5], %s309_s25, %s309_s25, %s310_s26  }
   0x8   :  { %304 = dma.done.wait [#allocation3], 512  }
   0x9   :  { %305 = vsyncadd [#allocation3], 4294966784 }
   0xa   :  { %306 = dma.done.wait [#allocation5], 512  }
   0xb   :  { %307 = vsyncadd [#allocation5], 4294966784  ;;  %vm70_vm0 = vcmask 261120   ;;  %v68_v0 = vld [vmem:[%s443_s0] sm:$0xff]  ;;  %v69_v2 = vld [vmem:[%s443_s0 + $0x8] sm:$0xff]  ;;  %v312_v4 = vmov 32.0  }
   0xc   :  { %v71_v1 = vsel %vm70_vm0, %v68_v0, 0.0  ;;  %v74_v3 = vsel %vm70_vm0, %v69_v2, 0.0  ;;  %250 = vrcp.f32 %v312_v4  ;;  %v137_v21 = vld [vmem:[%s446_s3 + $0x10] sm:$0xff]  ;;  %v138_v22 = vld [vmem:[%s446_s3 + $0x18] sm:$0xff]  ;;  %v135_v30 = vld [vmem:[%s446_s3] sm:$0xff]  ;;  %vm164_vm8 = vcmask 257024  }
   0xd   :  { %72 = vadd.xlane.f32.xlu0 %v71_v1  ;;  %v169_v23 = vld [vmem:[#allocation2 + $0x10] sm:$0xff]  ;;  %v140_v24 = vpack.c.bf16 %v138_v22, %v137_v21  ;;  %v170_v25 = vld [vmem:[#allocation2 + $0x18] sm:$0xff]  ;;  %v136_v31 = vld [vmem:[%s446_s3 + $0x8] sm:$0xff] }
   0xe   :  { %v197_v26 = vld [vmem:[#allocation4 + $0x10] sm:$0xff]  ;;  %v198_v27 = vld [vmem:[#allocation4 + $0x18] sm:$0xff]  ;;  %v172_v28 = vpack.c.bf16 %v170_v25, %v169_v23  ;;  %v167_v32 = vld [vmem:[#allocation2] sm:$0xff]  ;;  %v139_v34 = vpack.c.bf16 %v136_v31, %v135_v30 }
   0xf   :  { %v200_v29 = vpack.c.bf16 %v198_v27, %v197_v26  ;;  %154 = vmatpush.bf16.msra.mxu0 %v140_v24  ;;  %v168_v35 = vld [vmem:[#allocation2 + $0x8] sm:$0xff]  ;;  %v195_v36 = vld [vmem:[#allocation4] sm:$0xff] }
  0x10   :  { %v196_v37 = vld [vmem:[#allocation4 + $0x8] sm:$0xff]  ;;  %183 = vmatpush.bf16.msra.mxu1 %v172_v28  ;;  %v171_v39 = vpack.c.bf16 %v168_v35, %v167_v32  ;;  %v245_v58 = vld [vmem:[%s444_s1] ss:$0 sm:$0xff] }
  0x11   :  { %211 = vmatpush.bf16.msra.mxu2 %v200_v29  ;;  %v199_v40 = vpack.c.bf16 %v196_v37, %v195_v36  ;;  %v246_v63 = vld [vmem:[%s445_s2] ss:$0 sm:$0xff] }
  0x12   :  { %v251_v5 = vpop.eup %250  ;;  %v247_v4 = vld [vmem:[%s449_s6] ss:$0 sm:$0xff] }
  0x13   :  { %v78_v6 = vmul.f32 32.0, %v251_v5  ;;  %vm82_vm1 = vweird.f32 %v251_v5  ;;  %155 = vmatpush.bf16.msra.mxu0 %v139_v34 }
  0x14   :  { %184 = vmatpush.bf16.msra.mxu1 %v171_v39 }
  0x15   :  { %75 = vadd.xlane.f32.xlu0 %v74_v3  ;;  %v79_v7 = vsub.f32 1.0, %v78_v6  ;;  %212 = vmatpush.bf16.msra.mxu2 %v199_v40 }
  0x17   :  { %v80_v8 = vmul.f32 %v251_v5, %v79_v7 }
  0x19   :  { %v81_v9 = vadd.f32 %v251_v5, %v80_v8 }
  0x1b   :  { %v83_v10 = vsel %vm82_vm1, %v251_v5, %v81_v9  ;;  %v248_v5 = vld [vmem:[%s450_s7] ss:$0 sm:$0xff] }
  0x80   :  { %v73_v11 = vpop.xlane.xlu0 %72 }
  0x81   :  { %v84_v12 = vmul.f32 %v83_v10, %v73_v11 }
  0x83   :  { %v86_v13 = vsub.f32 %v68_v0, %v84_v12  ;;  %v249_v12 = vld [vmem:[%s451_s8] ss:$0 sm:$0xff] }
  0x85   :  { %v88_v14 = vmul.f32 %v86_v13, %v86_v13 }
  0x87   :  { %v90_v15 = vsel %vm70_vm0, %v88_v14, 0.0 }
  0x88   :  { %91 = vadd.xlane.f32.xlu1 %v90_v15  ;;  %v76_v16 = vpop.xlane.xlu0 %75 }
  0x89   :  { %v85_v17 = vmul.f32 %v83_v10, %v76_v16 }
  0x8b   :  { %v87_v18 = vsub.f32 %v69_v2, %v85_v17 }
  0x8d   :  { %v89_v19 = vmul.f32 %v87_v18, %v87_v18 }
  0x8f   :  { %v93_v20 = vsel %vm70_vm0, %v89_v19, 0.0 }
  0x90   :  { %94 = vadd.xlane.f32.xlu1 %v93_v20 }
  0xfb   :  { %v92_v33 = vpop.xlane.xlu1 %91 }
  0xfc   :  { %v96_v38 = vmul.f32 %v92_v33, %v83_v10 }
  0xfe   :  { %v98_v41 = vadd.f32 1e-06, %v96_v38 }
 0x100   :  { %252 = vrsqrt.f32 %v98_v41  ;;  %vm106_vm3 = vweird.f32 %v98_v41 }
 0x103   :  { %v95_v42 = vpop.xlane.xlu1 %94 }
 0x104   :  { %v97_v43 = vmul.f32 %v95_v42, %v83_v10 }
 0x106   :  { %v253_v44 = vpop.eup %252  ;;  %v99_v45 = vadd.f32 1e-06, %v97_v43 }
 0x107   :  { %v101_v46 = vmul.f32 %v253_v44, %v98_v41  ;;  %vm107_vm2 = vweird.f32 %v253_v44 }
 0x108   :  { %254 = vrsqrt.f32 %v99_v45  ;;  %vm108_vm4 = vmor %vm106_vm3, %vm107_vm2  ;;  %vm116_vm6 = vweird.f32 %v99_v45 }
 0x109   :  { %v102_v47 = vmul.f32 %v253_v44, %v101_v46 }
 0x10b   :  { %v103_v48 = vmul.f32 0.5, %v102_v47 }
 0x10d   :  { %v104_v49 = vsub.f32 1.5, %v103_v48 }
 0x10e   :  { %v255_v50 = vpop.eup %254 }
 0x10f   :  { %v105_v51 = vmul.f32 %v253_v44, %v104_v49  ;;  %v111_v52 = vmul.f32 %v255_v50, %v99_v45  ;;  %vm117_vm5 = vweird.f32 %v255_v50 }
 0x110   :  { %vm118_vm7 = vmor %vm116_vm6, %vm117_vm5 }
 0x111   :  { %v112_v53 = vmul.f32 %v255_v50, %v111_v52  ;;  %v109_v54 = vsel %vm108_vm4, %v253_v44, %v105_v51 }
 0x112   :  { %v120_v57 = vmul.f32 %v109_v54, %v86_v13 }
 0x113   :  { %v113_v55 = vmul.f32 0.5, %v112_v53 }
 0x114   :  { %v126_v62 = vmul.f32 %v245_v58, %v120_v57 }
 0x115   :  { %v114_v56 = vsub.f32 1.5, %v113_v55 }
 0x116   :  { %v132_v1 = vadd.f32 %v246_v63, %v126_v62 }
 0x117   :  { %v115_v59 = vmul.f32 %v255_v50, %v114_v56 }
 0x119   :  { %v119_v60 = vsel %vm118_vm7, %v255_v50, %v115_v59 }
 0x11a   :  { %v121_v61 = vmul.f32 %v119_v60, %v87_v18 }
 0x11c   :  { %v127_v0 = vmul.f32 %v245_v58, %v121_v61 }
 0x11e   :  { %v133_v2 = vadd.f32 %v246_v63, %v127_v0 }
 0x120   :  { %v134_v3 = vpack.c.bf16 %v133_v2, %v132_v1 }
 0x122   :  { %237 = vmatmul.msk.bf16.vlgmr.msra.gmra.mxu0 %vm70_vm0, %v134_v3  ;;  %238 = vmatmul.msk.bf16.vlgmr.msra.gmra.mxu1 %vm70_vm0, %v134_v3 }
 0x123   :  { %239 = vmatmul.msk.bf16.vlgmr.msra.gmra.mxu2 %vm70_vm0, %v134_v3 }
 0x19f   :  { %v157_v6 = vpop.f32.mrf.mxu0  ;;  %v186_v7 = vpop.f32.mrf.mxu1 }
 0x1a0   :  { %v158_v8 = vadd.f32 %v247_v4, %v157_v6  ;;  %v187_v9 = vadd.f32 %v248_v5, %v186_v7 }
 0x1a2   :  { %v162_v10 = vpack.c.bf16 %v158_v8, %v158_v8  ;;  %v191_v11 = vpack.c.bf16 %v187_v9, %v187_v9 }
 0x1a4   :  { %165 = vst.msk [vmem:[%s452_s9] sm:$0xf] %vm164_vm8, %v162_v10 }
 0x1a5   :  { %193 = vst.msk [vmem:[%s453_s10] sm:$0xf] %vm164_vm8, %v191_v11 }
 0x1a6   :  { %v214_v13 = vpop.f32.mrf.mxu2 }
 0x1a7   :  { %v215_v14 = vadd.f32 %v249_v12, %v214_v13  ;;  %v159_v15 = vpop.f32.mrf.mxu0  ;;  %v188_v16 = vpop.f32.mrf.mxu1 }
 0x1a8   :  { %v160_v17 = vadd.f32 %v247_v4, %v159_v15  ;;  %v189_v18 = vadd.f32 %v248_v5, %v188_v16 }
 0x1a9   :  { %v219_v19 = vpack.c.bf16 %v215_v14, %v215_v14 }
 0x1aa   :  { %v163_v20 = vpack.c.bf16 %v160_v17, %v160_v17  ;;  %v192_v21 = vpack.c.bf16 %v189_v18, %v189_v18 }
 0x1ab   :  { %221 = vst.msk [vmem:[%s454_s11] sm:$0xf] %vm164_vm8, %v219_v19 }
 0x1ac   :  { %166 = vst.msk [vmem:[%s452_s9 + $0x4] sm:$0xf] %vm164_vm8, %v163_v20 }
 0x1ad   :  { %194 = vst.msk [vmem:[%s453_s10 + $0x4] sm:$0xf] %vm164_vm8, %v192_v21 }
 0x1ae   :  { %v216_v22 = vpop.f32.mrf.mxu2 }
 0x1af   :  { %v217_v23 = vadd.f32 %v249_v12, %v216_v22 }
 0x1b1   :  { %v220_v24 = vpack.c.bf16 %v217_v23, %v217_v23 }
 0x1b3   :  { %222 = vst.msk [vmem:[%s454_s11 + $0x4] sm:$0xf] %vm164_vm8, %v220_v24 }
 0x1b4   :  { %235 = vsyncpa [#allocation3], 1 }
 0x1b5   :  { %236 = vsyncpa [#allocation5], 1 }

// kernel: tvtsbert_prediction_forward.13
= control target key start
LH: loop header
LB: loop body
LE: loop exit
PB: predicated region body
PF: predicated region fallthrough
CT: control target
= control target key end

     0   :  { %vm35_vm0 = vcmask 261120   ;;  %s125_s1 = inlined_call_operand.vmem [shape: f32[32,32], index: 1, kind: input, shape index: {}]   ;;  %s126_s2 = inlined_call_operand.vmem [shape: f32[1,32], index: 2, kind: input, shape index: {}]   ;;  %s127_s0 = inlined_call_operand.vmem [shape: bf16[16,32], index: 0, kind: input, shape index: {}]   ;;  %s128_s3 = inlined_call_operand.vmem [shape: f32[16,32], index: 3, kind: input, shape index: {}]   ;;  %s129_s4 = inlined_call_operand.vmem [shape: f32[16,32], index: 4, kind: output, shape index: {}]  }
   0x1   :  { %v22_v0 = vld [vmem:[%s125_s1 + $0x10] sm:$0xff]  ;;  %v23_v1 = vld [vmem:[%s125_s1 + $0x18] sm:$0xff]  ;;  %v20_v2 = vld [vmem:[%s125_s1] sm:$0xff] }
   0x2   :  { %v25_v3 = vpack.c.bf16 %v23_v1, %v22_v0  ;;  %v21_v4 = vld [vmem:[%s125_s1 + $0x8] sm:$0xff]  ;;  %v68_v6 = vld [vmem:[%s127_s0] sm:$0xff] }
   0x3   :  { %v24_v5 = vpack.c.bf16 %v21_v4, %v20_v2  ;;  %v69_v7 = vld [vmem:[%s126_s2] ss:$0 sm:$0xff]  ;;  %v54_v13 = vld [vmem:[%s128_s3 + $0x8] sm:$0xff] }
   0x4   :  { %45 = vmatpush.bf16.msra.mxu0 %v25_v3  ;;  %v53_v9 = vld [vmem:[%s128_s3] sm:$0xff] }
   0x8   :  { %46 = vmatpush.bf16.msra.mxu0 %v24_v5 }
   0xb   :  { %67 = vmatmul.msk.bf16.vlgmr.msra.gmra.mxu0 %vm35_vm0, %v68_v6 }
  0x88   :  { %v48_v8 = vpop.f32.mrf.mxu0 }
  0x89   :  { %v49_v10 = vadd.f32 %v69_v7, %v48_v8 }
  0x8b   :  { %v55_v11 = vadd.f32 %v53_v9, %v49_v10 }
  0x8d   :  { %57 = vst.msk [vmem:[%s129_s4] sm:$0xff] %vm35_vm0, %v55_v11 }
  0x90   :  { %v50_v12 = vpop.f32.mrf.mxu0 }
  0x91   :  { %v51_v14 = vadd.f32 %v69_v7, %v50_v12 }
  0x93   :  { %v56_v15 = vadd.f32 %v54_v13, %v51_v14 }
  0x95   :  { %58 = vst.msk [vmem:[%s129_s4 + $0x8] sm:$0xff] %vm35_vm0, %v56_v15 }

// kernel: tvtsbert_prediction_forward.12
= control target key start
LH: loop header
LB: loop body
LE: loop exit
PB: predicated region body
PF: predicated region fallthrough
CT: control target
= control target key end

     0   :  { %s642_s15 = smov 0   ;;  %s644_s16 = smov 0   ;;  %s701_s0 = inlined_call_operand.vmem [shape: bf16[8,8,8], index: 0, kind: input, shape index: {}]   ;;  %s702_s1 = inlined_call_operand.vmem [shape: bf16[8,8,8], index: 1, kind: input, shape index: {}]   ;;  %s703_s2 = inlined_call_operand.vmem [shape: bf16[8,8,8], index: 2, kind: input, shape index: {}]   ;;  %s704_s3 = inlined_call_operand.vmem [shape: f32[8,1,8], index: 3, kind: input, shape index: {}]   ;;  %s705_s4 = inlined_call_operand.vmem [shape: bf16[8,8,8], index: 4, kind: output, shape index: {}]  }
   0x1   :  { %s646_s17 = smov 0  }
   0x2 LB: > { %s33_s18 = sadd.s32 1, %s608_s16  ;;  %p544_p0 = scmp.ge.s32.totalorder %s612_s17, 1  ;;  %s612_s17 = sphi %s646_s17, %s14_s17   ;;  %s608_s16 = sphi %s644_s16, %s707_s16   ;;  %s604_s15 = sphi %s642_s15, %s706_s15  }
   0x3   : > { %p35_p1 = scmp.ge.s32.totalorder %s33_s18, 8  ;;  %p228_p2 = scmp.lt.s32.totalorder %s612_s17, 9 }
   0x5   : > { %s709_s18 = smov (%p35_p1, %s33_s18), 0  ;;  %p229_p3 = pnand %p544_p0, %p228_p2 }
   0x6   : > { %p278_p4 = scmp.lt.s32.totalorder (!%p229_p3), %s604_s15, 7 }
   0x7   : > { %232 = sbr.rel (%p229_p3) target bundleno = 629 (0x275), region = 36 }
   0xc   : > { %s711_s15 = smov (!%p278_p4, %s604_s15), 7  ;;  %vm320_vm0 = vcmask 64512   ;;  %vm317_vm1 = vcmask 7168   ;;  %v614_v3 = vmov -1e+30   ;;  %v615_v10 = vmov 0  }
   0xd   : > { %s660_s19 = sshll.u32 %s711_s15, 2  ;;  %s304_s28 = scalar_lea.vmem %s704_s3, %s711_s15  ;;  %318 = vst.msk [vmem:[#allocation2] sm:$0xff] %vm317_vm1, %v614_v3  ;;  %580 = vset.pattern.permute.xlu0 %v615_v10  ;;  %581 = vset.pattern.permute.xlu1 %v615_v10  ;;  %v616_v11 = vmov 0.0   ;;  %vm386_vm2 = vcmask 1043456   ;;  %vm419_vm3 = vcmask 60416  }
   0xe   : > { %s291_s22 = scalar_lea.vmem %s702_s1, %s660_s19  ;;  %s284_s25 = scalar_lea.vmem %s701_s0, %s660_s19  ;;  %v583_v4 = vld [vmem:[%s304_s28] ss:$0 sm:$0xff]  ;;  %582 = vset.pattern.permute.xlu2 %v615_v10  ;;  %319 = vst.msk [vmem:[#allocation3] sm:$0xff] %vm317_vm1, %v616_v11 }
   0xf   : > { %v323_v0 = vld [vmem:[%s291_s22] sm:$0xf]  ;;  %321 = vst.msk [vmem:[#allocation4] sm:$0xff] %vm320_vm0, %v616_v11  ;;  %s298_s5 = scalar_lea.vmem %s703_s2, %s660_s19  ;;  %s311_s8 = scalar_lea.vmem %s705_s4, %s660_s19 }
  0x10   : > { %v329_v1 = vsel %vm320_vm0, %v323_v0, 0  ;;  %v322_v2 = vld [vmem:[%s284_s25] sm:$0xf] }
  0x11   : > { %338 = vmatpush.bf16.xpose.msra.mxu0 %v329_v1  ;;  %v382_v16 = vld [vmem:[%s298_s5] sm:$0xf] }
  0x12   : > { %v388_v17 = vsel %vm386_vm2, %v382_v16, 0 }
  0x13   : > { %397 = vmatpush.bf16.msra.mxu1 %v388_v17 }
  0x14   : > { %v350_v12 = vld [vmem:[#allocation2] sm:$0xff] }
  0x15   : > { %v366_v26 = vld [vmem:[#allocation3] sm:$0xff] }
  0x16   : > { %v374_v34 = vld [vmem:[#allocation4] sm:$0xff] }
  0x18   : > { %549 = vmatmul.msk.bf16.vlgmr.msra.gmra.mxu0 %vm320_vm0, %v322_v2 }
  0x95   : > { %v340_v5 = vpop.f32.mrf.mxu0 }
  0x96   : > { %v344_v6 = vmul.f32 0.35355338, %v340_v5 }
  0x98   : > { %v349_v7 = vadd.f32 %v583_v4, %v344_v6 }
  0x9a   : > { %v351_v8 = vsel %vm320_vm0, %v349_v7, -inf }
  0x9b   : > { %352 = vmax.xlane.f32.xlu0 %v351_v8 }
  0x9d   : > { %v342_v9 = vpop.f32.mrf.mxu0 }
 0x10e   : > { %v353_v13 = vpop.xlane.xlu0 %352 }
 0x10f   : > { %v354_v14 = vmax.f32 %v350_v12, %v353_v13 }
 0x111   : > { %v355_v15 = vsub.f32 %v350_v12, %v354_v14  ;;  %405 = vst.msk [vmem:[#allocation2] sm:$0xff] %vm317_vm1, %v354_v14  ;;  %360 = vperm.xlu0 %580, %v354_v14  }
 0x113   : > { %v356_v24 = vmul.f32 1.442695, %v355_v15 }
 0x183   : > { %v361_v18 = vpop.permute.xlu0 %360 }
 0x184   : > { %v363_v19 = vsub.f32 %v349_v7, %v361_v18 }
 0x186   : > { %v364_v20 = vmul.f32 1.442695, %v363_v19 }
 0x188   : > { %584 = vpow2.f32 %v364_v20 }
 0x189   : > { %586 = vpow2.f32 %v356_v24 }
 0x18e   : > { %v585_v21 = vpop.eup %584 }
 0x18f   : > { %v368_v22 = vsel %vm320_vm0, %v585_v21, 0.0  ;;  %v381_v23 = vpack.c.bf16 %v585_v21, %v585_v21  ;;  %v587_v25 = vpop.eup %586 }
 0x190   : > { %369 = vadd.xlane.f32.xlu1 %v368_v22  ;;  %v367_v27 = vmul.f32 %v587_v25, %v366_v26 }
 0x191   : > { %550 = vmatmul.msk.bf16.vlgmr.msra.gmra.mxu1 %vm320_vm0, %v381_v23 }
 0x1a9   : > { %377 = vperm.xlu1 %581, %v587_v25  }
 0x203   : > { %v370_v28 = vpop.xlane.xlu1 %369 }
 0x204   : > { %v371_v29 = vadd.f32 %v370_v28, %v367_v27 }
 0x206   : > { %373 = vst.msk [vmem:[#allocation3] sm:$0xff] %vm317_vm1, %v371_v29 }
 0x20d   : > { %v410_v30 = vld [vmem:[#allocation3] sm:$0xff] }
 0x20e   : > { %v399_v31 = vpop.f32.mrf.mxu1  ;;  %588 = vrcp.f32 %v410_v30 }
 0x214   : > { %v589_v32 = vpop.eup %588 }
 0x215   : > { %414 = vperm.xlu2 %582, %v589_v32  }
 0x216   : > { %v401_v33 = vpop.f32.mrf.mxu1 }
 0x21b   : > { %v378_v35 = vpop.permute.xlu1 %377 }
 0x21c   : > { %v380_v36 = vmul.f32 %v378_v35, %v374_v34 }
 0x21e   : > { %v403_v37 = vadd.f32 %v399_v31, %v380_v36 }
 0x220   : > { %404 = vst.msk [vmem:[#allocation4] sm:$0xff] %vm320_vm0, %v403_v37 }
 0x227   : > { %v409_v38 = vld [vmem:[#allocation4] sm:$0xff] }
 0x26f   : > { %v415_v39 = vpop.permute.xlu2 %414 }
 0x270   : > { %v417_v40 = vmul.f32 %v415_v39, %v409_v38 }
 0x272   : > { %v418_v41 = vpack.c.bf16 %v417_v40, %v417_v40 }
 0x274   : > { %420 = vst.msk [vmem:[%s311_s8] sm:$0xf] %vm419_vm3, %v418_v41 }
 0x275 PF: > { %s14_s17 = sadd.s32 1, %s612_s17   ;;  %s706_s15 = smov %s608_s16 }
 0x276   : > { %p11_p5 = scmp.ge.s32.totalorder %s14_s17, 10   ;;  %s707_s16 = smov %s709_s18 }
 0x278   :  { %13 = sbr.rel (!%p11_p5) target bundleno = 2 (0x2), region = 83 }

// kernel: tvtsbert_prediction_forward.14
= control target key start
LH: loop header
LB: loop body
LE: loop exit
PB: predicated region body
PF: predicated region fallthrough
CT: control target
= control target key end

     0   :  { %vm33_vm0 = vcmask 261120   ;;  %v245_v4 = vmov 32.0   ;;  %vm99_vm6 = vcmask 257024   ;;  %s392_s0 = inlined_call_operand.vmem [shape: f32[16,32], index: 0, kind: input, shape index: {}]   ;;  %s393_s1 = inlined_call_operand.vmem [shape: f32[1,32], index: 1, kind: input, shape index: {}]   ;;  %s394_s2 = inlined_call_operand.vmem [shape: f32[1,32], index: 2, kind: input, shape index: {}]   ;;  %s395_s4 = inlined_call_operand.vmem [shape: f32[1,128], index: 4, kind: input, shape index: {}]   ;;  %s396_s3 = inlined_call_operand.vmem [shape: f32[32,128], index: 3, kind: input, shape index: {}]   ;;  %s397_s6 = inlined_call_operand.vmem [shape: f32[1,32], index: 6, kind: input, shape index: {}]   ;;  %s398_s5 = inlined_call_operand.vmem [shape: f32[128,32], index: 5, kind: input, shape index: {}]   ;;  %s399_s7 = inlined_call_operand.vmem [shape: f32[16,32], index: 7, kind: output, shape index: {}]  }
   0x1   :  { %v290_v0 = vld [vmem:[%s392_s0] sm:$0xff]  ;;  %v297_v2 = vld [vmem:[%s392_s0 + $0x8] sm:$0xff]  ;;  %235 = vrcp.f32 %v245_v4  ;;  %v108_v24 = vld [vmem:[%s396_s3 + $0x10] sm:$0xff] }
   0x2   :  { %v34_v1 = vsel %vm33_vm0, %v290_v0, 0.0  ;;  %v37_v3 = vsel %vm33_vm0, %v297_v2, 0.0  ;;  %v109_v25 = vld [vmem:[%s396_s3 + $0x18] sm:$0xff]  ;;  %v106_v27 = vld [vmem:[%s396_s3] sm:$0xff]  ;;  %v107_v28 = vld [vmem:[%s396_s3 + $0x8] sm:$0xff] }
   0x3   :  { %35 = vadd.xlane.f32.xlu0 %v34_v1  ;;  %v111_v26 = vpack.c.bf16 %v109_v25, %v108_v24  ;;  %v110_v31 = vpack.c.bf16 %v107_v28, %v106_v27  ;;  %v231_v41 = vld [vmem:[%s393_s1] ss:$0 sm:$0xff]  ;;  %v174_v58 = vld [vmem:[%s398_s5 + $0x70] sm:$0xff]  ;;  %v175_v59 = vld [vmem:[%s398_s5 + $0x78] sm:$0xff]  ;;  %v246_v24 = vmov 0.0  }
   0x4   :  { %v232_v44 = vld [vmem:[%s394_s2] ss:$0 sm:$0xff]  ;;  %v183_v60 = vpack.c.bf16 %v175_v59, %v174_v58  ;;  %v173_v62 = vld [vmem:[%s398_s5 + $0x68] sm:$0xff]  ;;  %v170_v1 = vld [vmem:[%s398_s5 + $0x50] sm:$0xff]  ;;  %102 = vst.msk [vmem:[#allocation3] sm:$0xff] %vm33_vm0, %v246_v24 }
   0x5   :  { %131 = vmatpush.bf16.msra.mxu0 %v111_v26  ;;  %v172_v61 = vld [vmem:[%s398_s5 + $0x60] sm:$0xff]  ;;  %103 = vst.msk [vmem:[#allocation3 + $0x8] sm:$0xff] %vm33_vm0, %v246_v24 }
   0x6   :  { %184 = vmatpush.bf16.msra.mxu1 %v183_v60  ;;  %v182_v63 = vpack.c.bf16 %v173_v62, %v172_v61 }
   0x7   :  { %v236_v5 = vpop.eup %235 }
   0x8   :  { %v41_v6 = vmul.f32 32.0, %v236_v5  ;;  %vm45_vm1 = vweird.f32 %v236_v5 }
   0x9   :  { %132 = vmatpush.bf16.msra.mxu0 %v110_v31 }
   0xa   :  { %v42_v7 = vsub.f32 1.0, %v41_v6  ;;  %185 = vmatpush.bf16.msra.mxu1 %v182_v63  ;;  %v169_v6 = vld [vmem:[%s398_s5 + $0x48] sm:$0xff] }
   0xb   :  { %38 = vadd.xlane.f32.xlu0 %v37_v3  ;;  %v171_v3 = vld [vmem:[%s398_s5 + $0x58] sm:$0xff] }
   0xc   :  { %v43_v8 = vmul.f32 %v236_v5, %v42_v7  ;;  %v181_v4 = vpack.c.bf16 %v171_v3, %v170_v1 }
   0xe   :  { %v44_v9 = vadd.f32 %v236_v5, %v43_v8  ;;  %186 = vmatpush.bf16.msra.mxu1 %v181_v4  ;;  %v166_v8 = vld [vmem:[%s398_s5 + $0x30] sm:$0xff] }
  0x10   :  { %v46_v10 = vsel %vm45_vm1, %v236_v5, %v44_v9  ;;  %v168_v5 = vld [vmem:[%s398_s5 + $0x40] sm:$0xff]  ;;  %v167_v9 = vld [vmem:[%s398_s5 + $0x38] sm:$0xff] }
  0x11   :  { %v180_v7 = vpack.c.bf16 %v169_v6, %v168_v5 }
  0x13   :  { %187 = vmatpush.bf16.msra.mxu1 %v180_v7 }
  0x76   :  { %v36_v11 = vpop.xlane.xlu0 %35 }
  0x77   :  { %v47_v12 = vmul.f32 %v46_v10, %v36_v11  ;;  %v164_v11 = vld [vmem:[%s398_s5 + $0x20] sm:$0xff] }
  0x79   :  { %v49_v13 = vsub.f32 %v290_v0, %v47_v12  ;;  %v165_v12 = vld [vmem:[%s398_s5 + $0x28] sm:$0xff] }
  0x7b   :  { %v51_v14 = vmul.f32 %v49_v13, %v49_v13 }
  0x7d   :  { %v53_v15 = vsel %vm33_vm0, %v51_v14, 0.0  ;;  %v162_v14 = vld [vmem:[%s398_s5 + $0x10] sm:$0xff] }
  0x7e   :  { %54 = vadd.xlane.f32.xlu1 %v53_v15  ;;  %v39_v16 = vpop.xlane.xlu0 %38  ;;  %v163_v15 = vld [vmem:[%s398_s5 + $0x18] sm:$0xff] }
  0x7f   :  { %v48_v17 = vmul.f32 %v46_v10, %v39_v16  ;;  %v177_v16 = vpack.c.bf16 %v163_v15, %v162_v14 }
  0x81   :  { %v50_v18 = vsub.f32 %v297_v2, %v48_v17  ;;  %v160_v17 = vld [vmem:[%s398_s5] sm:$0xff] }
  0x83   :  { %v52_v19 = vmul.f32 %v50_v18, %v50_v18 }
  0x85   :  { %v56_v20 = vsel %vm33_vm0, %v52_v19, 0.0 }
  0x86   :  { %57 = vadd.xlane.f32.xlu1 %v56_v20  ;;  %v233_v20 = vld [vmem:[%s395_s4] ss:$0 sm:$0xff] }
  0xf1   :  { %v55_v21 = vpop.xlane.xlu1 %54 }
  0xf2   :  { %v59_v22 = vmul.f32 %v55_v21, %v46_v10 }
  0xf4   :  { %v61_v23 = vadd.f32 1e-06, %v59_v22 }
  0xf6   :  { %237 = vrsqrt.f32 %v61_v23  ;;  %vm69_vm3 = vweird.f32 %v61_v23 }
  0xf9   :  { %v58_v29 = vpop.xlane.xlu1 %57 }
  0xfa   :  { %v60_v30 = vmul.f32 %v58_v29, %v46_v10  ;;  %v179_v10 = vpack.c.bf16 %v167_v9, %v166_v8 }
  0xfc   :  { %v238_v32 = vpop.eup %237  ;;  %v62_v33 = vadd.f32 1e-06, %v60_v30  ;;  %188 = vmatpush.bf16.msra.mxu1 %v179_v10 }
  0xfd   :  { %v64_v34 = vmul.f32 %v238_v32, %v61_v23  ;;  %vm70_vm2 = vweird.f32 %v238_v32 }
  0xfe   :  { %239 = vrsqrt.f32 %v62_v33  ;;  %vm71_vm4 = vmor %vm69_vm3, %vm70_vm2  ;;  %vm79_vm7 = vweird.f32 %v62_v33 }
  0xff   :  { %v65_v35 = vmul.f32 %v238_v32, %v64_v34 }
 0x101   :  { %v66_v36 = vmul.f32 0.5, %v65_v35 }
 0x103   :  { %v67_v37 = vsub.f32 1.5, %v66_v36 }
 0x104   :  { %v240_v38 = vpop.eup %239 }
 0x105   :  { %v68_v39 = vmul.f32 %v238_v32, %v67_v37  ;;  %v74_v40 = vmul.f32 %v240_v38, %v62_v33  ;;  %vm80_vm5 = vweird.f32 %v240_v38 }
 0x106   :  { %vm81_vm8 = vmor %vm79_vm7, %vm80_vm5 }
 0x107   :  { %v72_v42 = vsel %vm71_vm4, %v238_v32, %v68_v39  ;;  %v75_v43 = vmul.f32 %v240_v38, %v74_v40 }
 0x108   :  { %v83_v45 = vmul.f32 %v72_v42, %v49_v13  ;;  %v178_v13 = vpack.c.bf16 %v165_v12, %v164_v11 }
 0x109   :  { %v76_v46 = vmul.f32 0.5, %v75_v43 }
 0x10a   :  { %v89_v47 = vmul.f32 %v231_v41, %v83_v45  ;;  %189 = vmatpush.bf16.msra.mxu1 %v178_v13  ;;  %v157_v45 = vld [vmem:[#allocation3] sm:$0xff] }
 0x10b   :  { %v77_v48 = vsub.f32 1.5, %v76_v46 }
 0x10c   :  { %v95_v49 = vadd.f32 %v232_v44, %v89_v47 }
 0x10d   :  { %v78_v50 = vmul.f32 %v240_v38, %v77_v48  ;;  %v158_v48 = vld [vmem:[#allocation3 + $0x8] sm:$0xff] }
 0x10e   :  { %v97_v51 = vpack.c.bf16 %v95_v49, %v95_v49  ;;  %190 = vmatpush.bf16.msra.mxu1 %v177_v16  ;;  %v234_v49 = vld [vmem:[%s397_s6] ss:$0 sm:$0xff] }
 0x10f   :  { %v82_v52 = vsel %vm81_vm8, %v240_v38, %v78_v50 }
 0x110   :  { %100 = vst.msk [vmem:[#allocation2] sm:$0xf] %vm99_vm6, %v97_v51  ;;  %v84_v53 = vmul.f32 %v82_v52, %v50_v18  ;;  %v161_v18 = vld [vmem:[%s398_s5 + $0x8] sm:$0xff] }
 0x111   :  { %v176_v19 = vpack.c.bf16 %v161_v18, %v160_v17 }
 0x112   :  { %v90_v54 = vmul.f32 %v231_v41, %v84_v53 }
 0x113   :  { %191 = vmatpush.bf16.msra.mxu1 %v176_v19 }
 0x114   :  { %v96_v55 = vadd.f32 %v232_v44, %v90_v54 }
 0x116   :  { %v98_v56 = vpack.c.bf16 %v96_v55, %v96_v55 }
 0x118   :  { %101 = vst.msk [vmem:[#allocation2 + $0x4] sm:$0xf] %vm99_vm6, %v98_v56 }
 0x11f   :  { %v228_v57 = vld [vmem:[#allocation2] sm:$0xff] }
 0x120   :  { %227 = vmatmul.msk.bf16.vlgmr.msra.gmra.mxu0 %vm33_vm0, %v228_v57 }
 0x19d   :  { %v134_v21 = vpop.f32.mrf.mxu0 }
 0x19e   :  { %v135_v22 = vadd.f32 %v233_v20, %v134_v21 }
 0x1a0   :  { %v141_v23 = vmul.f32 0.044715, %v135_v22  ;;  %v139_v39 = vmul.f32 0.5, %v135_v22 }
 0x1a2   :  { %v143_v25 = vmul.f32 %v141_v23, %v135_v22 }
 0x1a4   :  { %v145_v26 = vmul.f32 %v143_v25, %v135_v22 }
 0x1a5   :  { %v136_v27 = vpop.f32.mrf.mxu0 }
 0x1a6   :  { %v137_v28 = vadd.f32 %v233_v20, %v136_v27  ;;  %v147_v29 = vadd.f32 %v145_v26, %v135_v22 }
 0x1a8   :  { %v142_v30 = vmul.f32 0.044715, %v137_v28  ;;  %v149_v32 = vmul.f32 0.7978846, %v147_v29  ;;  %v140_v40 = vmul.f32 0.5, %v137_v28 }
 0x1aa   :  { %v144_v31 = vmul.f32 %v142_v30, %v137_v28  ;;  %241 = vtanh.f32 %v149_v32 }
 0x1ac   :  { %v146_v33 = vmul.f32 %v144_v31, %v137_v28 }
 0x1ae   :  { %v148_v34 = vadd.f32 %v146_v33, %v137_v28 }
 0x1b0   :  { %v150_v35 = vmul.f32 0.7978846, %v148_v34  ;;  %v242_v36 = vpop.eup %241 }
 0x1b1   :  { %v153_v37 = vadd.f32 1.0, %v242_v36 }
 0x1b2   :  { %243 = vtanh.f32 %v150_v35 }
 0x1b3   :  { %v155_v42 = vmul.f32 %v153_v37, %v139_v39 }
 0x1b8   :  { %v244_v38 = vpop.eup %243 }
 0x1b9   :  { %v154_v41 = vadd.f32 1.0, %v244_v38 }
 0x1bb   :  { %v156_v43 = vmul.f32 %v154_v41, %v140_v40 }
 0x1bd   :  { %v159_v44 = vpack.c.bf16 %v156_v43, %v155_v42 }
 0x1bf   :  { %192 = vmatmul.bf16.vlgmr.msra.gmra.mxu1 %v159_v44 }
 0x23c   :  { %v193_v46 = vpop.f32.mrf.mxu1 }
 0x23d   :  { %v198_v47 = vadd.f32 %v193_v46, %v157_v45 }
 0x23f   :  { %200 = vst.msk [vmem:[#allocation3] sm:$0xff] %vm33_vm0, %v198_v47 }
 0x244   :  { %v195_v50 = vpop.f32.mrf.mxu1 }
 0x245   :  { %v199_v51 = vadd.f32 %v195_v50, %v158_v48 }
 0x246   :  { %v205_v52 = vld [vmem:[#allocation3] sm:$0xff] }
 0x247   :  { %v211_v53 = vadd.f32 %v234_v49, %v205_v52  ;;  %201 = vst.msk [vmem:[#allocation3 + $0x8] sm:$0xff] %vm33_vm0, %v199_v51 }
 0x249   :  { %v215_v54 = vadd.f32 %v211_v53, %v290_v0 }
 0x24b   :  { %217 = vst.msk [vmem:[%s399_s7] sm:$0xff] %vm33_vm0, %v215_v54 }
 0x24e   :  { %v206_v55 = vld [vmem:[#allocation3 + $0x8] sm:$0xff] }
 0x24f   :  { %v212_v56 = vadd.f32 %v234_v49, %v206_v55 }
 0x251   :  { %v216_v57 = vadd.f32 %v297_v2, %v212_v56 }
 0x253   :  { %218 = vst.msk [vmem:[%s399_s7 + $0x8] sm:$0xff] %vm33_vm0, %v216_v57 }

// kernel: tvtsbert_prediction_forward.15
= control target key start
LH: loop header
LB: loop body
LE: loop exit
PB: predicated region body
PF: predicated region fallthrough
CT: control target
= control target key end

     0   :  { %vm38_vm0 = vcmask 261120   ;;  %v218_v4 = vmov 32.0   ;;  %vm132_vm8 = vcmask 257024   ;;  %s377_s0 = inlined_call_operand.vmem [shape: f32[16,32], index: 0, kind: input, shape index: {}]   ;;  %s378_s1 = inlined_call_operand.vmem [shape: f32[1,32], index: 1, kind: input, shape index: {}]   ;;  %s379_s2 = inlined_call_operand.vmem [shape: f32[1,32], index: 2, kind: input, shape index: {}]   ;;  %s380_s6 = inlined_call_operand.vmem [shape: f32[1,32], index: 6, kind: input, shape index: {}]   ;;  %s381_s3 = inlined_call_operand.vmem [shape: f32[32,32], index: 3, kind: input, shape index: {}]   ;;  %s382_s4 = inlined_call_operand.vmem [shape: f32[32,32], index: 4, kind: input, shape index: {}]   ;;  %s383_s5 = inlined_call_operand.vmem [shape: f32[32,32], index: 5, kind: input, shape index: {}]   ;;  %s384_s7 = inlined_call_operand.vmem [shape: f32[1,32], index: 7, kind: input, shape index: {}]   ;;  %s385_s8 = inlined_call_operand.vmem [shape: f32[1,32], index: 8, kind: input, shape index: {}]   ;;  %s386_s9 = inlined_call_operand.vmem [shape: bf16[16,32], index: 9, kind: output, shape index: {0}]   ;;  %s387_s10 = inlined_call_operand.vmem [shape: bf16[16,32], index: 10, kind: output, shape index: {1}]   ;;  %s388_s11 = inlined_call_operand.vmem [shape: bf16[16,32], index: 11, kind: output, shape index: {2}]  }
   0x1   :  { %v36_v0 = vld [vmem:[%s377_s0] sm:$0xff]  ;;  %v37_v2 = vld [vmem:[%s377_s0 + $0x8] sm:$0xff]  ;;  %212 = vrcp.f32 %v218_v4  ;;  %v105_v21 = vld [vmem:[%s381_s3 + $0x10] sm:$0xff] }
   0x2   :  { %v39_v1 = vsel %vm38_vm0, %v36_v0, 0.0  ;;  %v42_v3 = vsel %vm38_vm0, %v37_v2, 0.0  ;;  %v106_v22 = vld [vmem:[%s381_s3 + $0x18] sm:$0xff]  ;;  %v137_v23 = vld [vmem:[%s382_s4 + $0x10] sm:$0xff]  ;;  %v103_v30 = vld [vmem:[%s381_s3] sm:$0xff] }
   0x3   :  { %40 = vadd.xlane.f32.xlu0 %v39_v1  ;;  %v108_v24 = vpack.c.bf16 %v106_v22, %v105_v21  ;;  %v138_v25 = vld [vmem:[%s382_s4 + $0x18] sm:$0xff]  ;;  %v165_v26 = vld [vmem:[%s383_s5 + $0x10] sm:$0xff]  ;;  %v104_v31 = vld [vmem:[%s381_s3 + $0x8] sm:$0xff] }
   0x4   :  { %v166_v27 = vld [vmem:[%s383_s5 + $0x18] sm:$0xff]  ;;  %v140_v28 = vpack.c.bf16 %v138_v25, %v137_v23  ;;  %v135_v32 = vld [vmem:[%s382_s4] sm:$0xff]  ;;  %v107_v34 = vpack.c.bf16 %v104_v31, %v103_v30  ;;  %v136_v35 = vld [vmem:[%s382_s4 + $0x8] sm:$0xff] }
   0x5   :  { %v168_v29 = vpack.c.bf16 %v166_v27, %v165_v26  ;;  %122 = vmatpush.bf16.msra.mxu0 %v108_v24  ;;  %v163_v36 = vld [vmem:[%s383_s5] sm:$0xff]  ;;  %v164_v37 = vld [vmem:[%s383_s5 + $0x8] sm:$0xff]  ;;  %v139_v39 = vpack.c.bf16 %v136_v35, %v135_v32 }
   0x6   :  { %151 = vmatpush.bf16.msra.mxu1 %v140_v28  ;;  %v167_v40 = vpack.c.bf16 %v164_v37, %v163_v36  ;;  %v207_v58 = vld [vmem:[%s378_s1] ss:$0 sm:$0xff] }
   0x7   :  { %v213_v5 = vpop.eup %212  ;;  %179 = vmatpush.bf16.msra.mxu2 %v168_v29  ;;  %v208_v63 = vld [vmem:[%s379_s2] ss:$0 sm:$0xff] }
   0x8   :  { %v46_v6 = vmul.f32 32.0, %v213_v5  ;;  %vm50_vm1 = vweird.f32 %v213_v5  ;;  %v209_v4 = vld [vmem:[%s380_s6] ss:$0 sm:$0xff] }
   0x9   :  { %123 = vmatpush.bf16.msra.mxu0 %v107_v34 }
   0xa   :  { %v47_v7 = vsub.f32 1.0, %v46_v6  ;;  %152 = vmatpush.bf16.msra.mxu1 %v139_v39 }
   0xb   :  { %43 = vadd.xlane.f32.xlu0 %v42_v3  ;;  %180 = vmatpush.bf16.msra.mxu2 %v167_v40 }
   0xc   :  { %v48_v8 = vmul.f32 %v213_v5, %v47_v7 }
   0xe   :  { %v49_v9 = vadd.f32 %v213_v5, %v48_v8 }
  0x10   :  { %v51_v10 = vsel %vm50_vm1, %v213_v5, %v49_v9  ;;  %v210_v5 = vld [vmem:[%s384_s7] ss:$0 sm:$0xff] }
  0x76   :  { %v41_v11 = vpop.xlane.xlu0 %40 }
  0x77   :  { %v52_v12 = vmul.f32 %v51_v10, %v41_v11 }
  0x79   :  { %v287_v13 = vsub.f32 %v36_v0, %v52_v12  ;;  %v211_v12 = vld [vmem:[%s385_s8] ss:$0 sm:$0xff] }
  0x7b   :  { %v56_v14 = vmul.f32 %v287_v13, %v287_v13 }
  0x7d   :  { %v58_v15 = vsel %vm38_vm0, %v56_v14, 0.0 }
  0x7e   :  { %59 = vadd.xlane.f32.xlu1 %v58_v15  ;;  %v44_v16 = vpop.xlane.xlu0 %43 }
  0x7f   :  { %v53_v17 = vmul.f32 %v51_v10, %v44_v16 }
  0x81   :  { %v292_v18 = vsub.f32 %v37_v2, %v53_v17 }
  0x83   :  { %v57_v19 = vmul.f32 %v292_v18, %v292_v18 }
  0x85   :  { %v61_v20 = vsel %vm38_vm0, %v57_v19, 0.0 }
  0x86   :  { %62 = vadd.xlane.f32.xlu1 %v61_v20 }
  0xf1   :  { %v60_v33 = vpop.xlane.xlu1 %59 }
  0xf2   :  { %v64_v38 = vmul.f32 %v60_v33, %v51_v10 }
  0xf4   :  { %v66_v41 = vadd.f32 1e-06, %v64_v38 }
  0xf6   :  { %214 = vrsqrt.f32 %v66_v41  ;;  %vm74_vm3 = vweird.f32 %v66_v41 }
  0xf9   :  { %v63_v42 = vpop.xlane.xlu1 %62 }
  0xfa   :  { %v65_v43 = vmul.f32 %v63_v42, %v51_v10 }
  0xfc   :  { %v215_v44 = vpop.eup %214  ;;  %v67_v45 = vadd.f32 1e-06, %v65_v43 }
  0xfd   :  { %v69_v46 = vmul.f32 %v215_v44, %v66_v41  ;;  %vm75_vm2 = vweird.f32 %v215_v44 }
  0xfe   :  { %216 = vrsqrt.f32 %v67_v45  ;;  %vm76_vm4 = vmor %vm74_vm3, %vm75_vm2  ;;  %vm84_vm6 = vweird.f32 %v67_v45 }
  0xff   :  { %v70_v47 = vmul.f32 %v215_v44, %v69_v46 }
 0x101   :  { %v71_v48 = vmul.f32 0.5, %v70_v47 }
 0x103   :  { %v72_v49 = vsub.f32 1.5, %v71_v48 }
 0x104   :  { %v217_v50 = vpop.eup %216 }
 0x105   :  { %v73_v51 = vmul.f32 %v215_v44, %v72_v49  ;;  %v79_v52 = vmul.f32 %v217_v50, %v67_v45  ;;  %vm85_vm5 = vweird.f32 %v217_v50 }
 0x106   :  { %vm86_vm7 = vmor %vm84_vm6, %vm85_vm5 }
 0x107   :  { %v80_v53 = vmul.f32 %v217_v50, %v79_v52  ;;  %v77_v54 = vsel %vm76_vm4, %v215_v44, %v73_v51 }
 0x108   :  { %v88_v57 = vmul.f32 %v77_v54, %v287_v13 }
 0x109   :  { %v81_v55 = vmul.f32 0.5, %v80_v53 }
 0x10a   :  { %v94_v62 = vmul.f32 %v207_v58, %v88_v57 }
 0x10b   :  { %v82_v56 = vsub.f32 1.5, %v81_v55 }
 0x10c   :  { %v100_v1 = vadd.f32 %v208_v63, %v94_v62 }
 0x10d   :  { %v83_v59 = vmul.f32 %v217_v50, %v82_v56 }
 0x10f   :  { %v87_v60 = vsel %vm86_vm7, %v217_v50, %v83_v59 }
 0x110   :  { %v89_v61 = vmul.f32 %v87_v60, %v292_v18 }
 0x112   :  { %v95_v0 = vmul.f32 %v207_v58, %v89_v61 }
 0x114   :  { %v101_v2 = vadd.f32 %v208_v63, %v95_v0 }
 0x116   :  { %v102_v3 = vpack.c.bf16 %v101_v2, %v100_v1 }
 0x118   :  { %203 = vmatmul.msk.bf16.vlgmr.msra.gmra.mxu0 %vm38_vm0, %v102_v3  ;;  %204 = vmatmul.msk.bf16.vlgmr.msra.gmra.mxu1 %vm38_vm0, %v102_v3 }
 0x119   :  { %205 = vmatmul.msk.bf16.vlgmr.msra.gmra.mxu2 %vm38_vm0, %v102_v3 }
 0x195   :  { %v125_v6 = vpop.f32.mrf.mxu0  ;;  %v154_v7 = vpop.f32.mrf.mxu1 }
 0x196   :  { %v126_v8 = vadd.f32 %v209_v4, %v125_v6  ;;  %v155_v9 = vadd.f32 %v210_v5, %v154_v7 }
 0x198   :  { %v130_v10 = vpack.c.bf16 %v126_v8, %v126_v8  ;;  %v159_v11 = vpack.c.bf16 %v155_v9, %v155_v9 }
 0x19a   :  { %133 = vst.msk [vmem:[%s386_s9] sm:$0xf] %vm132_vm8, %v130_v10 }
 0x19b   :  { %161 = vst.msk [vmem:[%s387_s10] sm:$0xf] %vm132_vm8, %v159_v11 }
 0x19c   :  { %v182_v13 = vpop.f32.mrf.mxu2 }
 0x19d   :  { %v183_v14 = vadd.f32 %v211_v12, %v182_v13  ;;  %v127_v15 = vpop.f32.mrf.mxu0  ;;  %v156_v16 = vpop.f32.mrf.mxu1 }
 0x19e   :  { %v128_v17 = vadd.f32 %v209_v4, %v127_v15  ;;  %v157_v18 = vadd.f32 %v210_v5, %v156_v16 }
 0x19f   :  { %v187_v19 = vpack.c.bf16 %v183_v14, %v183_v14 }
 0x1a0   :  { %v131_v20 = vpack.c.bf16 %v128_v17, %v128_v17  ;;  %v160_v21 = vpack.c.bf16 %v157_v18, %v157_v18 }
 0x1a1   :  { %189 = vst.msk [vmem:[%s388_s11] sm:$0xf] %vm132_vm8, %v187_v19 }
 0x1a2   :  { %134 = vst.msk [vmem:[%s386_s9 + $0x4] sm:$0xf] %vm132_vm8, %v131_v20 }
 0x1a3   :  { %162 = vst.msk [vmem:[%s387_s10 + $0x4] sm:$0xf] %vm132_vm8, %v160_v21 }
 0x1a4   :  { %v184_v22 = vpop.f32.mrf.mxu2 }
 0x1a5   :  { %v185_v23 = vadd.f32 %v211_v12, %v184_v22 }
 0x1a7   :  { %v188_v24 = vpack.c.bf16 %v185_v23, %v185_v23 }
 0x1a9   :  { %190 = vst.msk [vmem:[%s388_s11 + $0x4] sm:$0xf] %vm132_vm8, %v188_v24 }

// kernel: tvtsbert_prediction_forward.19
= control target key start
LH: loop header
LB: loop body
LE: loop exit
PB: predicated region body
PF: predicated region fallthrough
CT: control target
= control target key end

     0   :  { %vm28_vm0 = vcmask 261120   ;;  %s101_s1 = inlined_call_operand.vmem [shape: f32[32,128], index: 1, kind: input, shape index: {}]   ;;  %s102_s0 = inlined_call_operand.vmem [shape: f32[16,32], index: 0, kind: input, shape index: {}]   ;;  %s103_s2 = inlined_call_operand.vmem [shape: f32[1,128], index: 2, kind: input, shape index: {}]   ;;  %s104_s3 = inlined_call_operand.vmem [shape: f32[16,128], index: 3, kind: output, shape index: {}]  }
   0x1   :  { %v20_v0 = vld [vmem:[%s101_s1 + $0x10] sm:$0xff]  ;;  %v21_v1 = vld [vmem:[%s101_s1 + $0x18] sm:$0xff]  ;;  %v18_v2 = vld [vmem:[%s101_s1] sm:$0xff] }
   0x2   :  { %v23_v3 = vpack.c.bf16 %v21_v1, %v20_v0  ;;  %v19_v4 = vld [vmem:[%s101_s1 + $0x8] sm:$0xff]  ;;  %v15_v6 = vld [vmem:[%s102_s0] sm:$0xff] }
   0x3   :  { %v22_v5 = vpack.c.bf16 %v19_v4, %v18_v2  ;;  %v16_v7 = vld [vmem:[%s102_s0 + $0x8] sm:$0xff]  ;;  %v53_v9 = vld [vmem:[%s103_s2] ss:$0 sm:$0xff] }
   0x4   :  { %38 = vmatpush.bf16.msra.mxu0 %v23_v3  ;;  %v17_v8 = vpack.c.bf16 %v16_v7, %v15_v6 }
   0x8   :  { %39 = vmatpush.bf16.msra.mxu0 %v22_v5 }
   0xb   :  { %52 = vmatmul.msk.bf16.vlgmr.msra.gmra.mxu0 %vm28_vm0, %v17_v8 }
  0x88   :  { %v41_v10 = vpop.f32.mrf.mxu0 }
  0x89   :  { %v42_v11 = vadd.f32 %v53_v9, %v41_v10 }
  0x8b   :  { %46 = vst [vmem:[%s104_s3] sm:$0xff] %v42_v11 }
  0x90   :  { %v43_v12 = vpop.f32.mrf.mxu0 }
  0x91   :  { %v44_v13 = vadd.f32 %v53_v9, %v43_v12 }
  0x93   :  { %47 = vst [vmem:[%s104_s3 + $0x8] sm:$0xff] %v44_v13 }

</bundles_post_ra>
